<compile_context>
chip_gen: v7x
topology: tpu7x:2x2x1
jax: 0.10.0
libtpu: 0.0.40
codegen_flags: <defaults>
</compile_context>

<pallas_src>
import jax
import jax.numpy as jnp
import numpy as np
from jax.experimental import pallas as pl
from jax.experimental.pallas import tpu as pltpu


# ------------------------------ fused kernel --------------------------------
def crae_kernel(enc_xproj_ref, enc_whh1_ref, enc_w2_ref, enc_b2_ref,
                dec_wiz1_ref, dec_cterm_ref, dec_whh1_ref, dec_w2_ref, dec_b2_ref,
                out_ref):
    f32 = jnp.float32
    B = dec_cterm_ref.shape[0]
    H = dec_whh1_ref.shape[0]
    T = enc_xproj_ref.shape[0] // B

    def cell(gates, c_prev):
        # PyTorch gate order (i, f, g, o). One sigmoid over the whole (B, 4H) vreg,
        # then lane-slice the activated gates; tanh only on the g slice.
        sig = jax.nn.sigmoid(gates)
        i = sig[:, 0 * H:1 * H]
        f = sig[:, 1 * H:2 * H]
        o = sig[:, 3 * H:4 * H]
        g = jnp.tanh(gates[:, 2 * H:3 * H])
        c_new = f * c_prev + i * g
        h_new = o * jnp.tanh(c_new)
        return h_new, c_new

    def cell0(gates):
        # t=0 specialization: c_prev == 0, so the forget-gate term vanishes.
        sig = jax.nn.sigmoid(gates)
        i = sig[:, 0 * H:1 * H]
        o = sig[:, 3 * H:4 * H]
        g = jnp.tanh(gates[:, 2 * H:3 * H])
        c_new = i * g
        h_new = o * jnp.tanh(c_new)
        return h_new, c_new

    # Hoist weight loads out of the unrolled loops.
    enc_whh1 = enc_whh1_ref[...]          # (H, 4H)
    enc_w2 = enc_w2_ref[...]              # (2H, 4H) = [wih2 ; whh2]
    enc_b2 = enc_b2_ref[...]              # (1, 4H)

    # ------------------------------- encoder --------------------------------
    # t = 0 peeled: h1 = h2 = 0, so no recurrent (whh1 / whh2) matmuls.
    g1 = enc_xproj_ref[pl.ds(0, B), :]
    h1, c1 = cell0(g1)
    g2 = jnp.dot(h1, enc_w2[:H, :], preferred_element_type=f32) + enc_b2
    h2, c2 = cell0(g2)

    for t in range(1, T):
        g1 = (enc_xproj_ref[pl.ds(t * B, B), :]
              + jnp.dot(h1, enc_whh1, preferred_element_type=f32))
        h1, c1 = cell(g1, c1)
        # K-fused layer-2 matmul: [h1 | h2] @ [wih2 ; whh2].
        g2 = (jnp.dot(jnp.concatenate([h1, h2], axis=1), enc_w2,
                      preferred_element_type=f32)
              + enc_b2)
        h2, c2 = cell(g2, c2)
    z = h2                                # h_end[-1] of the encoder (stays in VMEM)

    # ------------------------------- decoder --------------------------------
    # Decoder input is constant over time: [z, c]. Its layer-1 projection is computed once:
    # z part here (z only exists in-kernel), c part + bias precomputed in XLA (dec_cterm).
    dec_in1 = (jnp.dot(z, dec_wiz1_ref[...], preferred_element_type=f32)
               + dec_cterm_ref[...])
    dec_whh1 = dec_whh1_ref[...]          # (H, 4H)
    dec_w2 = dec_w2_ref[...]              # (2H, 4H) = [wih2 ; whh2]
    dec_b2 = dec_b2_ref[...]              # (1, 4H)

    # t = 0 peeled (zero recurrent state).
    h1, c1 = cell0(dec_in1)
    g2 = jnp.dot(h1, dec_w2[:H, :], preferred_element_type=f32) + dec_b2
    h2, c2 = cell0(g2)
    hs = [h2]

    for t in range(1, T):
        g1 = dec_in1 + jnp.dot(h1, dec_whh1, preferred_element_type=f32)
        h1, c1 = cell(g1, c1)
        g2 = (jnp.dot(jnp.concatenate([h1, h2], axis=1), dec_w2,
                      preferred_element_type=f32)
              + dec_b2)
        h2, c2 = cell(g2, c2)
        hs.append(h2)

    # Single lane-dense store: [z | h2(0) | ... | h2(T-1)]  ->  (B, (T+1)*H).
    out_ref[...] = jnp.concatenate([z] + hs, axis=1)


# -------------------------------- wrapper ------------------------------------
def crae_forward(x_btf, c, p):
    """x_btf: (B, T, F) float32, c: (B, C) float32.  Returns (x_hat (B, T, F), z (B, H))."""
    B, T, F = x_btf.shape
    H = p["enc_whh1"].shape[0]
    C = c.shape[1]

    # Encoder layer-1 input projection for all timesteps (non-recurrent) -> one XLA matmul.
    xc = jnp.concatenate(
        [x_btf, jnp.broadcast_to(c[:, None, :], (B, T, C))], axis=-1)        # (B, T, F+C)
    enc_xproj = jnp.einsum("bti,ig->btg", xc, p["enc_wih1"]) + p["enc_b1"]   # (B, T, 4H)
    # Flatten to (T*B, 4H): dense (8,128) tiles, row t*B + b = (timestep t, batch b).
    enc_xproj = jnp.transpose(enc_xproj, (1, 0, 2)).reshape(T * B, 4 * H)

    # Constant c-part of the decoder layer-1 input projection (+ combined bias).
    dec_cterm = jnp.dot(c, p["dec_wic1"]) + p["dec_b1"]                      # (B, 4H)

    # K-fused layer-2 weights: [wih2 ; whh2] -> (2H, 4H).
    enc_w2 = jnp.concatenate([p["enc_wih2"], p["enc_whh2"]], axis=0)
    dec_w2 = jnp.concatenate([p["dec_wih2"], p["dec_whh2"]], axis=0)

    # NOTE: on v6e/v7x, casting the weight operands + h-state to bf16 before each dot
    # (keeping preferred_element_type=f32 and all elementwise state math in f32) halves
    # MXU operand bandwidth; kept f32 here so the 1e-3 reference check holds everywhere.
    vmem = pl.BlockSpec(memory_space=pltpu.MemorySpace.VMEM)
    zd = pl.pallas_call(
        crae_kernel,
        out_shape=jax.ShapeDtypeStruct((B, (T + 1) * H), jnp.float32),
        in_specs=[vmem] * 9,
        out_specs=vmem,
    )(enc_xproj, p["enc_whh1"], enc_w2, p["enc_b2"],
      p["dec_wiz1"], dec_cterm, p["dec_whh1"], dec_w2, p["dec_b2"])

    z = zd[:, :H]                                                            # (B, H)
    dh = zd[:, H:].reshape(B, T, H)                                          # (B, T, H)

    # Output head (Linear + sigmoid), batched over all B*T rows in XLA.
    x_hat = jax.nn.sigmoid(jnp.einsum("bth,hf->btf", dh, p["out_w"]) + p["out_b"][None])
    return x_hat, z


# ------------------------ deterministic parameter init ----------------------
def init_params(key, n_features, hidden, c_dim):
    H = hidden
    bound = 1.0 / np.sqrt(H)

    def u(k, shape):
        return jax.random.uniform(k, shape, jnp.float32, -bound, bound)

    ks = iter(jax.random.split(key, 32))
    p = {
        # encoder layer 1: input (F + C); layer 2: input H. Biases are b_ih + b_hh combined.
        "enc_wih1": u(next(ks), (n_features + c_dim, 4 * H)),
        "enc_whh1": u(next(ks), (H, 4 * H)),
        "enc_b1":   u(next(ks), (1, 4 * H)) + u(next(ks), (1, 4 * H)),
        "enc_wih2": u(next(ks), (H, 4 * H)),
        "enc_whh2": u(next(ks), (H, 4 * H)),
        "enc_b2":   u(next(ks), (1, 4 * H)) + u(next(ks), (1, 4 * H)),
        # decoder layer 1: input [z, c] split into z-rows and c-rows; layer 2: input H.
        "dec_wiz1": u(next(ks), (H, 4 * H)),
        "dec_wic1": u(next(ks), (c_dim, 4 * H)),
        "dec_whh1": u(next(ks), (H, 4 * H)),
        "dec_b1":   u(next(ks), (1, 4 * H)) + u(next(ks), (1, 4 * H)),
        "dec_wih2": u(next(ks), (H, 4 * H)),
        "dec_whh2": u(next(ks), (H, 4 * H)),
        "dec_b2":   u(next(ks), (1, 4 * H)) + u(next(ks), (1, 4 * H)),
        # output linear H -> F (stored transposed)
        "out_w": u(next(ks), (H, n_features)),
        "out_b": u(next(ks), (1, n_features)),
    }
    return p


# ---------------------------- pure-JAX reference -----------------------------
def _lstm_layer_ref(x_tbi, w_ih, w_hh, b):
    B = x_tbi.shape[1]
    H = w_hh.shape[0]

    def step(carry, x_t):
        h, c = carry
        gates = x_t @ w_ih + h @ w_hh + b
        i = jax.nn.sigmoid(gates[:, 0 * H:1 * H])
        f = jax.nn.sigmoid(gates[:, 1 * H:2 * H])
        g = jnp.tanh(gates[:, 2 * H:3 * H])
        o = jax.nn.sigmoid(gates[:, 3 * H:4 * H])
        c_new = f * c + i * g
        h_new = o * jnp.tanh(c_new)
        return (h_new, c_new), h_new

    init = (jnp.zeros((B, H), jnp.float32), jnp.zeros((B, H), jnp.float32))
    (h, _), ys = jax.lax.scan(step, init, x_tbi)
    return ys, h


def crae_reference(x_btf, c, p):
    B, T, F = x_btf.shape
    H = p["enc_whh1"].shape[0]
    C = c.shape[1]
    xc = jnp.concatenate([x_btf, jnp.broadcast_to(c[:, None, :], (B, T, C))], axis=-1)
    x_tbi = jnp.transpose(xc, (1, 0, 2))
    y1, _ = _lstm_layer_ref(x_tbi, p["enc_wih1"], p["enc_whh1"], p["enc_b1"])
    _, z = _lstm_layer_ref(y1, p["enc_wih2"], p["enc_whh2"], p["enc_b2"])

    zc = jnp.concatenate([z, c], axis=1)
    dec_in = jnp.broadcast_to(zc[None], (T,) + zc.shape)
    dec_wih1 = jnp.concatenate([p["dec_wiz1"], p["dec_wic1"]], axis=0)
    d1, _ = _lstm_layer_ref(dec_in, dec_wih1, p["dec_whh1"], p["dec_b1"])
    d2, _ = _lstm_layer_ref(d1, p["dec_wih2"], p["dec_whh2"], p["dec_b2"])
    out = jax.nn.sigmoid(jnp.einsum("tbh,hf->tbf", d2, p["out_w"]) + p["out_b"][None])
    return jnp.transpose(out, (1, 0, 2)), z


# ----------------------------------- main ------------------------------------
if __name__ == "__main__":
    batch, seq_len, n_features, hidden, n_labels = 2, 8, 4, 32, 9

    key = jax.random.PRNGKey(0)
    kx, kc, kp = jax.random.split(key, 3)
    x = jax.random.normal(kx, (batch, seq_len, n_features), jnp.float32)
    c = jax.nn.one_hot(jax.random.randint(kc, (batch,), 0, n_labels), n_labels,
                       dtype=jnp.float32)
    params = init_params(kp, n_features, hidden, n_labels)

    x_hat, z = jax.jit(crae_forward)(x, c, params)
    jax.block_until_ready((x_hat, z))

    # sanity-check against the pure-JAX reference
    x_hat_ref, z_ref = crae_reference(x, c, params)
    assert x_hat.shape == (batch, seq_len, n_features)
    assert z.shape == (batch, hidden)
    np.testing.assert_allclose(np.asarray(z), np.asarray(z_ref), rtol=1e-3, atol=1e-3)
    np.testing.assert_allclose(np.asarray(x_hat), np.asarray(x_hat_ref), rtol=1e-3, atol=1e-3)

    print("KERNEL_OK")
</pallas_src>

<mosaic_0001>
module attributes {stable_mosaic.version = 11 : i64} {
  func.func @crae_kernel(%arg0: memref<16x128xf32, #tpu.memory_space<vmem>>, %arg1: memref<32x128xf32, #tpu.memory_space<vmem>>, %arg2: memref<64x128xf32, #tpu.memory_space<vmem>>, %arg3: memref<1x128xf32, #tpu.memory_space<vmem>>, %arg4: memref<32x128xf32, #tpu.memory_space<vmem>>, %arg5: memref<2x128xf32, #tpu.memory_space<vmem>>, %arg6: memref<32x128xf32, #tpu.memory_space<vmem>>, %arg7: memref<64x128xf32, #tpu.memory_space<vmem>>, %arg8: memref<1x128xf32, #tpu.memory_space<vmem>>, %arg9: memref<2x288xf32, #tpu.memory_space<vmem>>) attributes {dimension_semantics = [], scalar_prefetch = 0 : i64, scratch_operands = 0 : i64, tpu.core_type = #tpu.core_type<tc>} {
    %c0 = arith.constant 0 : index
    %c0_0 = arith.constant 0 : index
    %0 = vector.load %arg1[%c0, %c0_0] : memref<32x128xf32, #tpu.memory_space<vmem>>, vector<32x128xf32>
    %c0_1 = arith.constant 0 : index
    %c0_2 = arith.constant 0 : index
    %1 = vector.load %arg2[%c0_1, %c0_2] : memref<64x128xf32, #tpu.memory_space<vmem>>, vector<64x128xf32>
    %c0_3 = arith.constant 0 : index
    %c0_4 = arith.constant 0 : index
    %2 = vector.load %arg3[%c0_3, %c0_4] : memref<1x128xf32, #tpu.memory_space<vmem>>, vector<1x128xf32>
    %c0_5 = arith.constant 0 : index
    %c0_6 = arith.constant 0 : index
    %3 = vector.load %arg0[%c0_5, %c0_6] : memref<16x128xf32, #tpu.memory_space<vmem>>, vector<2x128xf32>
    %4 = arith.negf %3 : vector<2x128xf32>
    %5 = math.exp %4 : vector<2x128xf32>
    %cst = arith.constant 1.000000e+00 : f32
    %6 = vector.broadcast %cst : f32 to vector<2x128xf32>
    %7 = arith.addf %6, %5 : vector<2x128xf32>
    %8 = arith.divf %6, %7 : vector<2x128xf32>
    %9 = vector.extract_strided_slice %8 {offsets = [0, 0], sizes = [2, 32], strides = [1, 1]} : vector<2x128xf32> to vector<2x32xf32>
    %10 = vector.extract_strided_slice %8 {offsets = [0, 96], sizes = [2, 32], strides = [1, 1]} : vector<2x128xf32> to vector<2x32xf32>
    %11 = vector.extract_strided_slice %3 {offsets = [0, 64], sizes = [2, 32], strides = [1, 1]} : vector<2x128xf32> to vector<2x32xf32>
    %12 = math.tanh %11 : vector<2x32xf32>
    %13 = arith.mulf %9, %12 : vector<2x32xf32>
    %14 = math.tanh %13 : vector<2x32xf32>
    %15 = arith.mulf %10, %14 : vector<2x32xf32>
    %16 = vector.extract_strided_slice %1 {offsets = [0, 0], sizes = [32, 128], strides = [1, 1]} : vector<64x128xf32> to vector<32x128xf32>
    %cst_7 = arith.constant dense<0.000000e+00> : vector<2x128xf32>
    %17 = tpu.matmul %15, %16, %cst_7 {dimension_numbers = #tpu.dot_dimension_numbers<[1], [0], [0], [1], [0, 0, 1, 1], [], []>} : vector<2x32xf32>, vector<32x128xf32>, vector<2x128xf32> -> vector<2x128xf32>
    %18 = vector.broadcast %2 : vector<1x128xf32> to vector<2x128xf32>
    %19 = arith.addf %17, %18 : vector<2x128xf32>
    %20 = arith.negf %19 : vector<2x128xf32>
    %21 = math.exp %20 : vector<2x128xf32>
    %cst_8 = arith.constant 1.000000e+00 : f32
    %22 = vector.broadcast %cst_8 : f32 to vector<2x128xf32>
    %23 = arith.addf %22, %21 : vector<2x128xf32>
    %24 = arith.divf %22, %23 : vector<2x128xf32>
    %25 = vector.extract_strided_slice %24 {offsets = [0, 0], sizes = [2, 32], strides = [1, 1]} : vector<2x128xf32> to vector<2x32xf32>
    %26 = vector.extract_strided_slice %24 {offsets = [0, 96], sizes = [2, 32], strides = [1, 1]} : vector<2x128xf32> to vector<2x32xf32>
    %27 = vector.extract_strided_slice %19 {offsets = [0, 64], sizes = [2, 32], strides = [1, 1]} : vector<2x128xf32> to vector<2x32xf32>
    %28 = math.tanh %27 : vector<2x32xf32>
    %29 = arith.mulf %25, %28 : vector<2x32xf32>
    %30 = math.tanh %29 : vector<2x32xf32>
    %31 = arith.mulf %26, %30 : vector<2x32xf32>
    %c2 = arith.constant 2 : index
    %c0_9 = arith.constant 0 : index
    %32 = vector.load %arg0[%c2, %c0_9] : memref<16x128xf32, #tpu.memory_space<vmem>>, vector<2x128xf32>
    %cst_10 = arith.constant dense<0.000000e+00> : vector<2x128xf32>
    %33 = tpu.matmul %15, %0, %cst_10 {dimension_numbers = #tpu.dot_dimension_numbers<[1], [0], [0], [1], [0, 0, 1, 1], [], []>} : vector<2x32xf32>, vector<32x128xf32>, vector<2x128xf32> -> vector<2x128xf32>
    %34 = arith.addf %32, %33 : vector<2x128xf32>
    %35 = arith.negf %34 : vector<2x128xf32>
    %36 = math.exp %35 : vector<2x128xf32>
    %cst_11 = arith.constant 1.000000e+00 : f32
    %37 = vector.broadcast %cst_11 : f32 to vector<2x128xf32>
    %38 = arith.addf %37, %36 : vector<2x128xf32>
    %39 = arith.divf %37, %38 : vector<2x128xf32>
    %40 = vector.extract_strided_slice %39 {offsets = [0, 0], sizes = [2, 32], strides = [1, 1]} : vector<2x128xf32> to vector<2x32xf32>
    %41 = vector.extract_strided_slice %39 {offsets = [0, 32], sizes = [2, 32], strides = [1, 1]} : vector<2x128xf32> to vector<2x32xf32>
    %42 = vector.extract_strided_slice %39 {offsets = [0, 96], sizes = [2, 32], strides = [1, 1]} : vector<2x128xf32> to vector<2x32xf32>
    %43 = vector.extract_strided_slice %34 {offsets = [0, 64], sizes = [2, 32], strides = [1, 1]} : vector<2x128xf32> to vector<2x32xf32>
    %44 = math.tanh %43 : vector<2x32xf32>
    %45 = arith.mulf %41, %13 : vector<2x32xf32>
    %46 = arith.mulf %40, %44 : vector<2x32xf32>
    %47 = arith.addf %45, %46 : vector<2x32xf32>
    %48 = math.tanh %47 : vector<2x32xf32>
    %49 = arith.mulf %42, %48 : vector<2x32xf32>
    %50 = tpu.concatenate %49, %31 in 1 : vector<2x32xf32>, vector<2x32xf32> -> vector<2x64xf32>
    %cst_12 = arith.constant dense<0.000000e+00> : vector<2x128xf32>
    %51 = tpu.matmul %50, %1, %cst_12 {dimension_numbers = #tpu.dot_dimension_numbers<[1], [0], [0], [1], [0, 0, 1, 1], [], []>} : vector<2x64xf32>, vector<64x128xf32>, vector<2x128xf32> -> vector<2x128xf32>
    %52 = vector.broadcast %2 : vector<1x128xf32> to vector<2x128xf32>
    %53 = arith.addf %51, %52 : vector<2x128xf32>
    %54 = arith.negf %53 : vector<2x128xf32>
    %55 = math.exp %54 : vector<2x128xf32>
    %cst_13 = arith.constant 1.000000e+00 : f32
    %56 = vector.broadcast %cst_13 : f32 to vector<2x128xf32>
    %57 = arith.addf %56, %55 : vector<2x128xf32>
    %58 = arith.divf %56, %57 : vector<2x128xf32>
    %59 = vector.extract_strided_slice %58 {offsets = [0, 0], sizes = [2, 32], strides = [1, 1]} : vector<2x128xf32> to vector<2x32xf32>
    %60 = vector.extract_strided_slice %58 {offsets = [0, 32], sizes = [2, 32], strides = [1, 1]} : vector<2x128xf32> to vector<2x32xf32>
    %61 = vector.extract_strided_slice %58 {offsets = [0, 96], sizes = [2, 32], strides = [1, 1]} : vector<2x128xf32> to vector<2x32xf32>
    %62 = vector.extract_strided_slice %53 {offsets = [0, 64], sizes = [2, 32], strides = [1, 1]} : vector<2x128xf32> to vector<2x32xf32>
    %63 = math.tanh %62 : vector<2x32xf32>
    %64 = arith.mulf %60, %29 : vector<2x32xf32>
    %65 = arith.mulf %59, %63 : vector<2x32xf32>
    %66 = arith.addf %64, %65 : vector<2x32xf32>
    %67 = math.tanh %66 : vector<2x32xf32>
    %68 = arith.mulf %61, %67 : vector<2x32xf32>
    %c4 = arith.constant 4 : index
    %c0_14 = arith.constant 0 : index
    %69 = vector.load %arg0[%c4, %c0_14] : memref<16x128xf32, #tpu.memory_space<vmem>>, vector<2x128xf32>
    %cst_15 = arith.constant dense<0.000000e+00> : vector<2x128xf32>
    %70 = tpu.matmul %49, %0, %cst_15 {dimension_numbers = #tpu.dot_dimension_numbers<[1], [0], [0], [1], [0, 0, 1, 1], [], []>} : vector<2x32xf32>, vector<32x128xf32>, vector<2x128xf32> -> vector<2x128xf32>
    %71 = arith.addf %69, %70 : vector<2x128xf32>
    %72 = arith.negf %71 : vector<2x128xf32>
    %73 = math.exp %72 : vector<2x128xf32>
    %cst_16 = arith.constant 1.000000e+00 : f32
    %74 = vector.broadcast %cst_16 : f32 to vector<2x128xf32>
    %75 = arith.addf %74, %73 : vector<2x128xf32>
    %76 = arith.divf %74, %75 : vector<2x128xf32>
    %77 = vector.extract_strided_slice %76 {offsets = [0, 0], sizes = [2, 32], strides = [1, 1]} : vector<2x128xf32> to vector<2x32xf32>
    %78 = vector.extract_strided_slice %76 {offsets = [0, 32], sizes = [2, 32], strides = [1, 1]} : vector<2x128xf32> to vector<2x32xf32>
    %79 = vector.extract_strided_slice %76 {offsets = [0, 96], sizes = [2, 32], strides = [1, 1]} : vector<2x128xf32> to vector<2x32xf32>
    %80 = vector.extract_strided_slice %71 {offsets = [0, 64], sizes = [2, 32], strides = [1, 1]} : vector<2x128xf32> to vector<2x32xf32>
    %81 = math.tanh %80 : vector<2x32xf32>
    %82 = arith.mulf %78, %47 : vector<2x32xf32>
    %83 = arith.mulf %77, %81 : vector<2x32xf32>
    %84 = arith.addf %82, %83 : vector<2x32xf32>
    %85 = math.tanh %84 : vector<2x32xf32>
    %86 = arith.mulf %79, %85 : vector<2x32xf32>
    %87 = tpu.concatenate %86, %68 in 1 : vector<2x32xf32>, vector<2x32xf32> -> vector<2x64xf32>
    %cst_17 = arith.constant dense<0.000000e+00> : vector<2x128xf32>
    %88 = tpu.matmul %87, %1, %cst_17 {dimension_numbers = #tpu.dot_dimension_numbers<[1], [0], [0], [1], [0, 0, 1, 1], [], []>} : vector<2x64xf32>, vector<64x128xf32>, vector<2x128xf32> -> vector<2x128xf32>
    %89 = vector.broadcast %2 : vector<1x128xf32> to vector<2x128xf32>
    %90 = arith.addf %88, %89 : vector<2x128xf32>
    %91 = arith.negf %90 : vector<2x128xf32>
    %92 = math.exp %91 : vector<2x128xf32>
    %cst_18 = arith.constant 1.000000e+00 : f32
    %93 = vector.broadcast %cst_18 : f32 to vector<2x128xf32>
    %94 = arith.addf %93, %92 : vector<2x128xf32>
    %95 = arith.divf %93, %94 : vector<2x128xf32>
    %96 = vector.extract_strided_slice %95 {offsets = [0, 0], sizes = [2, 32], strides = [1, 1]} : vector<2x128xf32> to vector<2x32xf32>
    %97 = vector.extract_strided_slice %95 {offsets = [0, 32], sizes = [2, 32], strides = [1, 1]} : vector<2x128xf32> to vector<2x32xf32>
    %98 = vector.extract_strided_slice %95 {offsets = [0, 96], sizes = [2, 32], strides = [1, 1]} : vector<2x128xf32> to vector<2x32xf32>
    %99 = vector.extract_strided_slice %90 {offsets = [0, 64], sizes = [2, 32], strides = [1, 1]} : vector<2x128xf32> to vector<2x32xf32>
    %100 = math.tanh %99 : vector<2x32xf32>
    %101 = arith.mulf %97, %66 : vector<2x32xf32>
    %102 = arith.mulf %96, %100 : vector<2x32xf32>
    %103 = arith.addf %101, %102 : vector<2x32xf32>
    %104 = math.tanh %103 : vector<2x32xf32>
    %105 = arith.mulf %98, %104 : vector<2x32xf32>
    %c6 = arith.constant 6 : index
    %c0_19 = arith.constant 0 : index
    %106 = vector.load %arg0[%c6, %c0_19] : memref<16x128xf32, #tpu.memory_space<vmem>>, vector<2x128xf32>
    %cst_20 = arith.constant dense<0.000000e+00> : vector<2x128xf32>
    %107 = tpu.matmul %86, %0, %cst_20 {dimension_numbers = #tpu.dot_dimension_numbers<[1], [0], [0], [1], [0, 0, 1, 1], [], []>} : vector<2x32xf32>, vector<32x128xf32>, vector<2x128xf32> -> vector<2x128xf32>
    %108 = arith.addf %106, %107 : vector<2x128xf32>
    %109 = arith.negf %108 : vector<2x128xf32>
    %110 = math.exp %109 : vector<2x128xf32>
    %cst_21 = arith.constant 1.000000e+00 : f32
    %111 = vector.broadcast %cst_21 : f32 to vector<2x128xf32>
    %112 = arith.addf %111, %110 : vector<2x128xf32>
    %113 = arith.divf %111, %112 : vector<2x128xf32>
    %114 = vector.extract_strided_slice %113 {offsets = [0, 0], sizes = [2, 32], strides = [1, 1]} : vector<2x128xf32> to vector<2x32xf32>
    %115 = vector.extract_strided_slice %113 {offsets = [0, 32], sizes = [2, 32], strides = [1, 1]} : vector<2x128xf32> to vector<2x32xf32>
    %116 = vector.extract_strided_slice %113 {offsets = [0, 96], sizes = [2, 32], strides = [1, 1]} : vector<2x128xf32> to vector<2x32xf32>
    %117 = vector.extract_strided_slice %108 {offsets = [0, 64], sizes = [2, 32], strides = [1, 1]} : vector<2x128xf32> to vector<2x32xf32>
    %118 = math.tanh %117 : vector<2x32xf32>
    %119 = arith.mulf %115, %84 : vector<2x32xf32>
    %120 = arith.mulf %114, %118 : vector<2x32xf32>
    %121 = arith.addf %119, %120 : vector<2x32xf32>
    %122 = math.tanh %121 : vector<2x32xf32>
    %123 = arith.mulf %116, %122 : vector<2x32xf32>
    %124 = tpu.concatenate %123, %105 in 1 : vector<2x32xf32>, vector<2x32xf32> -> vector<2x64xf32>
    %cst_22 = arith.constant dense<0.000000e+00> : vector<2x128xf32>
    %125 = tpu.matmul %124, %1, %cst_22 {dimension_numbers = #tpu.dot_dimension_numbers<[1], [0], [0], [1], [0, 0, 1, 1], [], []>} : vector<2x64xf32>, vector<64x128xf32>, vector<2x128xf32> -> vector<2x128xf32>
    %126 = vector.broadcast %2 : vector<1x128xf32> to vector<2x128xf32>
    %127 = arith.addf %125, %126 : vector<2x128xf32>
    %128 = arith.negf %127 : vector<2x128xf32>
    %129 = math.exp %128 : vector<2x128xf32>
    %cst_23 = arith.constant 1.000000e+00 : f32
    %130 = vector.broadcast %cst_23 : f32 to vector<2x128xf32>
    %131 = arith.addf %130, %129 : vector<2x128xf32>
    %132 = arith.divf %130, %131 : vector<2x128xf32>
    %133 = vector.extract_strided_slice %132 {offsets = [0, 0], sizes = [2, 32], strides = [1, 1]} : vector<2x128xf32> to vector<2x32xf32>
    %134 = vector.extract_strided_slice %132 {offsets = [0, 32], sizes = [2, 32], strides = [1, 1]} : vector<2x128xf32> to vector<2x32xf32>
    %135 = vector.extract_strided_slice %132 {offsets = [0, 96], sizes = [2, 32], strides = [1, 1]} : vector<2x128xf32> to vector<2x32xf32>
    %136 = vector.extract_strided_slice %127 {offsets = [0, 64], sizes = [2, 32], strides = [1, 1]} : vector<2x128xf32> to vector<2x32xf32>
    %137 = math.tanh %136 : vector<2x32xf32>
    %138 = arith.mulf %134, %103 : vector<2x32xf32>
    %139 = arith.mulf %133, %137 : vector<2x32xf32>
    %140 = arith.addf %138, %139 : vector<2x32xf32>
    %141 = math.tanh %140 : vector<2x32xf32>
    %142 = arith.mulf %135, %141 : vector<2x32xf32>
    %c8 = arith.constant 8 : index
    %c0_24 = arith.constant 0 : index
    %143 = vector.load %arg0[%c8, %c0_24] : memref<16x128xf32, #tpu.memory_space<vmem>>, vector<2x128xf32>
    %cst_25 = arith.constant dense<0.000000e+00> : vector<2x128xf32>
    %144 = tpu.matmul %123, %0, %cst_25 {dimension_numbers = #tpu.dot_dimension_numbers<[1], [0], [0], [1], [0, 0, 1, 1], [], []>} : vector<2x32xf32>, vector<32x128xf32>, vector<2x128xf32> -> vector<2x128xf32>
    %145 = arith.addf %143, %144 : vector<2x128xf32>
    %146 = arith.negf %145 : vector<2x128xf32>
    %147 = math.exp %146 : vector<2x128xf32>
    %cst_26 = arith.constant 1.000000e+00 : f32
    %148 = vector.broadcast %cst_26 : f32 to vector<2x128xf32>
    %149 = arith.addf %148, %147 : vector<2x128xf32>
    %150 = arith.divf %148, %149 : vector<2x128xf32>
    %151 = vector.extract_strided_slice %150 {offsets = [0, 0], sizes = [2, 32], strides = [1, 1]} : vector<2x128xf32> to vector<2x32xf32>
    %152 = vector.extract_strided_slice %150 {offsets = [0, 32], sizes = [2, 32], strides = [1, 1]} : vector<2x128xf32> to vector<2x32xf32>
    %153 = vector.extract_strided_slice %150 {offsets = [0, 96], sizes = [2, 32], strides = [1, 1]} : vector<2x128xf32> to vector<2x32xf32>
    %154 = vector.extract_strided_slice %145 {offsets = [0, 64], sizes = [2, 32], strides = [1, 1]} : vector<2x128xf32> to vector<2x32xf32>
    %155 = math.tanh %154 : vector<2x32xf32>
    %156 = arith.mulf %152, %121 : vector<2x32xf32>
    %157 = arith.mulf %151, %155 : vector<2x32xf32>
    %158 = arith.addf %156, %157 : vector<2x32xf32>
    %159 = math.tanh %158 : vector<2x32xf32>
    %160 = arith.mulf %153, %159 : vector<2x32xf32>
    %161 = tpu.concatenate %160, %142 in 1 : vector<2x32xf32>, vector<2x32xf32> -> vector<2x64xf32>
    %cst_27 = arith.constant dense<0.000000e+00> : vector<2x128xf32>
    %162 = tpu.matmul %161, %1, %cst_27 {dimension_numbers = #tpu.dot_dimension_numbers<[1], [0], [0], [1], [0, 0, 1, 1], [], []>} : vector<2x64xf32>, vector<64x128xf32>, vector<2x128xf32> -> vector<2x128xf32>
    %163 = vector.broadcast %2 : vector<1x128xf32> to vector<2x128xf32>
    %164 = arith.addf %162, %163 : vector<2x128xf32>
    %165 = arith.negf %164 : vector<2x128xf32>
    %166 = math.exp %165 : vector<2x128xf32>
    %cst_28 = arith.constant 1.000000e+00 : f32
    %167 = vector.broadcast %cst_28 : f32 to vector<2x128xf32>
    %168 = arith.addf %167, %166 : vector<2x128xf32>
    %169 = arith.divf %167, %168 : vector<2x128xf32>
    %170 = vector.extract_strided_slice %169 {offsets = [0, 0], sizes = [2, 32], strides = [1, 1]} : vector<2x128xf32> to vector<2x32xf32>
    %171 = vector.extract_strided_slice %169 {offsets = [0, 32], sizes = [2, 32], strides = [1, 1]} : vector<2x128xf32> to vector<2x32xf32>
    %172 = vector.extract_strided_slice %169 {offsets = [0, 96], sizes = [2, 32], strides = [1, 1]} : vector<2x128xf32> to vector<2x32xf32>
    %173 = vector.extract_strided_slice %164 {offsets = [0, 64], sizes = [2, 32], strides = [1, 1]} : vector<2x128xf32> to vector<2x32xf32>
    %174 = math.tanh %173 : vector<2x32xf32>
    %175 = arith.mulf %171, %140 : vector<2x32xf32>
    %176 = arith.mulf %170, %174 : vector<2x32xf32>
    %177 = arith.addf %175, %176 : vector<2x32xf32>
    %178 = math.tanh %177 : vector<2x32xf32>
    %179 = arith.mulf %172, %178 : vector<2x32xf32>
    %c10 = arith.constant 10 : index
    %c0_29 = arith.constant 0 : index
    %180 = vector.load %arg0[%c10, %c0_29] : memref<16x128xf32, #tpu.memory_space<vmem>>, vector<2x128xf32>
    %cst_30 = arith.constant dense<0.000000e+00> : vector<2x128xf32>
    %181 = tpu.matmul %160, %0, %cst_30 {dimension_numbers = #tpu.dot_dimension_numbers<[1], [0], [0], [1], [0, 0, 1, 1], [], []>} : vector<2x32xf32>, vector<32x128xf32>, vector<2x128xf32> -> vector<2x128xf32>
    %182 = arith.addf %180, %181 : vector<2x128xf32>
    %183 = arith.negf %182 : vector<2x128xf32>
    %184 = math.exp %183 : vector<2x128xf32>
    %cst_31 = arith.constant 1.000000e+00 : f32
    %185 = vector.broadcast %cst_31 : f32 to vector<2x128xf32>
    %186 = arith.addf %185, %184 : vector<2x128xf32>
    %187 = arith.divf %185, %186 : vector<2x128xf32>
    %188 = vector.extract_strided_slice %187 {offsets = [0, 0], sizes = [2, 32], strides = [1, 1]} : vector<2x128xf32> to vector<2x32xf32>
    %189 = vector.extract_strided_slice %187 {offsets = [0, 32], sizes = [2, 32], strides = [1, 1]} : vector<2x128xf32> to vector<2x32xf32>
    %190 = vector.extract_strided_slice %187 {offsets = [0, 96], sizes = [2, 32], strides = [1, 1]} : vector<2x128xf32> to vector<2x32xf32>
    %191 = vector.extract_strided_slice %182 {offsets = [0, 64], sizes = [2, 32], strides = [1, 1]} : vector<2x128xf32> to vector<2x32xf32>
    %192 = math.tanh %191 : vector<2x32xf32>
    %193 = arith.mulf %189, %158 : vector<2x32xf32>
    %194 = arith.mulf %188, %192 : vector<2x32xf32>
    %195 = arith.addf %193, %194 : vector<2x32xf32>
    %196 = math.tanh %195 : vector<2x32xf32>
    %197 = arith.mulf %190, %196 : vector<2x32xf32>
    %198 = tpu.concatenate %197, %179 in 1 : vector<2x32xf32>, vector<2x32xf32> -> vector<2x64xf32>
    %cst_32 = arith.constant dense<0.000000e+00> : vector<2x128xf32>
    %199 = tpu.matmul %198, %1, %cst_32 {dimension_numbers = #tpu.dot_dimension_numbers<[1], [0], [0], [1], [0, 0, 1, 1], [], []>} : vector<2x64xf32>, vector<64x128xf32>, vector<2x128xf32> -> vector<2x128xf32>
    %200 = vector.broadcast %2 : vector<1x128xf32> to vector<2x128xf32>
    %201 = arith.addf %199, %200 : vector<2x128xf32>
    %202 = arith.negf %201 : vector<2x128xf32>
    %203 = math.exp %202 : vector<2x128xf32>
    %cst_33 = arith.constant 1.000000e+00 : f32
    %204 = vector.broadcast %cst_33 : f32 to vector<2x128xf32>
    %205 = arith.addf %204, %203 : vector<2x128xf32>
    %206 = arith.divf %204, %205 : vector<2x128xf32>
    %207 = vector.extract_strided_slice %206 {offsets = [0, 0], sizes = [2, 32], strides = [1, 1]} : vector<2x128xf32> to vector<2x32xf32>
    %208 = vector.extract_strided_slice %206 {offsets = [0, 32], sizes = [2, 32], strides = [1, 1]} : vector<2x128xf32> to vector<2x32xf32>
    %209 = vector.extract_strided_slice %206 {offsets = [0, 96], sizes = [2, 32], strides = [1, 1]} : vector<2x128xf32> to vector<2x32xf32>
    %210 = vector.extract_strided_slice %201 {offsets = [0, 64], sizes = [2, 32], strides = [1, 1]} : vector<2x128xf32> to vector<2x32xf32>
    %211 = math.tanh %210 : vector<2x32xf32>
    %212 = arith.mulf %208, %177 : vector<2x32xf32>
    %213 = arith.mulf %207, %211 : vector<2x32xf32>
    %214 = arith.addf %212, %213 : vector<2x32xf32>
    %215 = math.tanh %214 : vector<2x32xf32>
    %216 = arith.mulf %209, %215 : vector<2x32xf32>
    %c12 = arith.constant 12 : index
    %c0_34 = arith.constant 0 : index
    %217 = vector.load %arg0[%c12, %c0_34] : memref<16x128xf32, #tpu.memory_space<vmem>>, vector<2x128xf32>
    %cst_35 = arith.constant dense<0.000000e+00> : vector<2x128xf32>
    %218 = tpu.matmul %197, %0, %cst_35 {dimension_numbers = #tpu.dot_dimension_numbers<[1], [0], [0], [1], [0, 0, 1, 1], [], []>} : vector<2x32xf32>, vector<32x128xf32>, vector<2x128xf32> -> vector<2x128xf32>
    %219 = arith.addf %217, %218 : vector<2x128xf32>
    %220 = arith.negf %219 : vector<2x128xf32>
    %221 = math.exp %220 : vector<2x128xf32>
    %cst_36 = arith.constant 1.000000e+00 : f32
    %222 = vector.broadcast %cst_36 : f32 to vector<2x128xf32>
    %223 = arith.addf %222, %221 : vector<2x128xf32>
    %224 = arith.divf %222, %223 : vector<2x128xf32>
    %225 = vector.extract_strided_slice %224 {offsets = [0, 0], sizes = [2, 32], strides = [1, 1]} : vector<2x128xf32> to vector<2x32xf32>
    %226 = vector.extract_strided_slice %224 {offsets = [0, 32], sizes = [2, 32], strides = [1, 1]} : vector<2x128xf32> to vector<2x32xf32>
    %227 = vector.extract_strided_slice %224 {offsets = [0, 96], sizes = [2, 32], strides = [1, 1]} : vector<2x128xf32> to vector<2x32xf32>
    %228 = vector.extract_strided_slice %219 {offsets = [0, 64], sizes = [2, 32], strides = [1, 1]} : vector<2x128xf32> to vector<2x32xf32>
    %229 = math.tanh %228 : vector<2x32xf32>
    %230 = arith.mulf %226, %195 : vector<2x32xf32>
    %231 = arith.mulf %225, %229 : vector<2x32xf32>
    %232 = arith.addf %230, %231 : vector<2x32xf32>
    %233 = math.tanh %232 : vector<2x32xf32>
    %234 = arith.mulf %227, %233 : vector<2x32xf32>
    %235 = tpu.concatenate %234, %216 in 1 : vector<2x32xf32>, vector<2x32xf32> -> vector<2x64xf32>
    %cst_37 = arith.constant dense<0.000000e+00> : vector<2x128xf32>
    %236 = tpu.matmul %235, %1, %cst_37 {dimension_numbers = #tpu.dot_dimension_numbers<[1], [0], [0], [1], [0, 0, 1, 1], [], []>} : vector<2x64xf32>, vector<64x128xf32>, vector<2x128xf32> -> vector<2x128xf32>
    %237 = vector.broadcast %2 : vector<1x128xf32> to vector<2x128xf32>
    %238 = arith.addf %236, %237 : vector<2x128xf32>
    %239 = arith.negf %238 : vector<2x128xf32>
    %240 = math.exp %239 : vector<2x128xf32>
    %cst_38 = arith.constant 1.000000e+00 : f32
    %241 = vector.broadcast %cst_38 : f32 to vector<2x128xf32>
    %242 = arith.addf %241, %240 : vector<2x128xf32>
    %243 = arith.divf %241, %242 : vector<2x128xf32>
    %244 = vector.extract_strided_slice %243 {offsets = [0, 0], sizes = [2, 32], strides = [1, 1]} : vector<2x128xf32> to vector<2x32xf32>
    %245 = vector.extract_strided_slice %243 {offsets = [0, 32], sizes = [2, 32], strides = [1, 1]} : vector<2x128xf32> to vector<2x32xf32>
    %246 = vector.extract_strided_slice %243 {offsets = [0, 96], sizes = [2, 32], strides = [1, 1]} : vector<2x128xf32> to vector<2x32xf32>
    %247 = vector.extract_strided_slice %238 {offsets = [0, 64], sizes = [2, 32], strides = [1, 1]} : vector<2x128xf32> to vector<2x32xf32>
    %248 = math.tanh %247 : vector<2x32xf32>
    %249 = arith.mulf %245, %214 : vector<2x32xf32>
    %250 = arith.mulf %244, %248 : vector<2x32xf32>
    %251 = arith.addf %249, %250 : vector<2x32xf32>
    %252 = math.tanh %251 : vector<2x32xf32>
    %253 = arith.mulf %246, %252 : vector<2x32xf32>
    %c14 = arith.constant 14 : index
    %c0_39 = arith.constant 0 : index
    %254 = vector.load %arg0[%c14, %c0_39] : memref<16x128xf32, #tpu.memory_space<vmem>>, vector<2x128xf32>
    %cst_40 = arith.constant dense<0.000000e+00> : vector<2x128xf32>
    %255 = tpu.matmul %234, %0, %cst_40 {dimension_numbers = #tpu.dot_dimension_numbers<[1], [0], [0], [1], [0, 0, 1, 1], [], []>} : vector<2x32xf32>, vector<32x128xf32>, vector<2x128xf32> -> vector<2x128xf32>
    %256 = arith.addf %254, %255 : vector<2x128xf32>
    %257 = arith.negf %256 : vector<2x128xf32>
    %258 = math.exp %257 : vector<2x128xf32>
    %cst_41 = arith.constant 1.000000e+00 : f32
    %259 = vector.broadcast %cst_41 : f32 to vector<2x128xf32>
    %260 = arith.addf %259, %258 : vector<2x128xf32>
    %261 = arith.divf %259, %260 : vector<2x128xf32>
    %262 = vector.extract_strided_slice %261 {offsets = [0, 0], sizes = [2, 32], strides = [1, 1]} : vector<2x128xf32> to vector<2x32xf32>
    %263 = vector.extract_strided_slice %261 {offsets = [0, 32], sizes = [2, 32], strides = [1, 1]} : vector<2x128xf32> to vector<2x32xf32>
    %264 = vector.extract_strided_slice %261 {offsets = [0, 96], sizes = [2, 32], strides = [1, 1]} : vector<2x128xf32> to vector<2x32xf32>
    %265 = vector.extract_strided_slice %256 {offsets = [0, 64], sizes = [2, 32], strides = [1, 1]} : vector<2x128xf32> to vector<2x32xf32>
    %266 = math.tanh %265 : vector<2x32xf32>
    %267 = arith.mulf %263, %232 : vector<2x32xf32>
    %268 = arith.mulf %262, %266 : vector<2x32xf32>
    %269 = arith.addf %267, %268 : vector<2x32xf32>
    %270 = math.tanh %269 : vector<2x32xf32>
    %271 = arith.mulf %264, %270 : vector<2x32xf32>
    %272 = tpu.concatenate %271, %253 in 1 : vector<2x32xf32>, vector<2x32xf32> -> vector<2x64xf32>
    %cst_42 = arith.constant dense<0.000000e+00> : vector<2x128xf32>
    %273 = tpu.matmul %272, %1, %cst_42 {dimension_numbers = #tpu.dot_dimension_numbers<[1], [0], [0], [1], [0, 0, 1, 1], [], []>} : vector<2x64xf32>, vector<64x128xf32>, vector<2x128xf32> -> vector<2x128xf32>
    %274 = vector.broadcast %2 : vector<1x128xf32> to vector<2x128xf32>
    %275 = arith.addf %273, %274 : vector<2x128xf32>
    %276 = arith.negf %275 : vector<2x128xf32>
    %277 = math.exp %276 : vector<2x128xf32>
    %cst_43 = arith.constant 1.000000e+00 : f32
    %278 = vector.broadcast %cst_43 : f32 to vector<2x128xf32>
    %279 = arith.addf %278, %277 : vector<2x128xf32>
    %280 = arith.divf %278, %279 : vector<2x128xf32>
    %281 = vector.extract_strided_slice %280 {offsets = [0, 0], sizes = [2, 32], strides = [1, 1]} : vector<2x128xf32> to vector<2x32xf32>
    %282 = vector.extract_strided_slice %280 {offsets = [0, 32], sizes = [2, 32], strides = [1, 1]} : vector<2x128xf32> to vector<2x32xf32>
    %283 = vector.extract_strided_slice %280 {offsets = [0, 96], sizes = [2, 32], strides = [1, 1]} : vector<2x128xf32> to vector<2x32xf32>
    %284 = vector.extract_strided_slice %275 {offsets = [0, 64], sizes = [2, 32], strides = [1, 1]} : vector<2x128xf32> to vector<2x32xf32>
    %285 = math.tanh %284 : vector<2x32xf32>
    %286 = arith.mulf %282, %251 : vector<2x32xf32>
    %287 = arith.mulf %281, %285 : vector<2x32xf32>
    %288 = arith.addf %286, %287 : vector<2x32xf32>
    %289 = math.tanh %288 : vector<2x32xf32>
    %290 = arith.mulf %283, %289 : vector<2x32xf32>
    %c0_44 = arith.constant 0 : index
    %c0_45 = arith.constant 0 : index
    %291 = vector.load %arg4[%c0_44, %c0_45] : memref<32x128xf32, #tpu.memory_space<vmem>>, vector<32x128xf32>
    %cst_46 = arith.constant dense<0.000000e+00> : vector<2x128xf32>
    %292 = tpu.matmul %290, %291, %cst_46 {dimension_numbers = #tpu.dot_dimension_numbers<[1], [0], [0], [1], [0, 0, 1, 1], [], []>} : vector<2x32xf32>, vector<32x128xf32>, vector<2x128xf32> -> vector<2x128xf32>
    %c0_47 = arith.constant 0 : index
    %c0_48 = arith.constant 0 : index
    %293 = vector.load %arg5[%c0_47, %c0_48] : memref<2x128xf32, #tpu.memory_space<vmem>>, vector<2x128xf32>
    %294 = arith.addf %292, %293 : vector<2x128xf32>
    %c0_49 = arith.constant 0 : index
    %c0_50 = arith.constant 0 : index
    %295 = vector.load %arg6[%c0_49, %c0_50] : memref<32x128xf32, #tpu.memory_space<vmem>>, vector<32x128xf32>
    %c0_51 = arith.constant 0 : index
    %c0_52 = arith.constant 0 : index
    %296 = vector.load %arg7[%c0_51, %c0_52] : memref<64x128xf32, #tpu.memory_space<vmem>>, vector<64x128xf32>
    %c0_53 = arith.constant 0 : index
    %c0_54 = arith.constant 0 : index
    %297 = vector.load %arg8[%c0_53, %c0_54] : memref<1x128xf32, #tpu.memory_space<vmem>>, vector<1x128xf32>
    %298 = arith.negf %294 : vector<2x128xf32>
    %299 = math.exp %298 : vector<2x128xf32>
    %cst_55 = arith.constant 1.000000e+00 : f32
    %300 = vector.broadcast %cst_55 : f32 to vector<2x128xf32>
    %301 = arith.addf %300, %299 : vector<2x128xf32>
    %302 = arith.divf %300, %301 : vector<2x128xf32>
    %303 = vector.extract_strided_slice %302 {offsets = [0, 0], sizes = [2, 32], strides = [1, 1]} : vector<2x128xf32> to vector<2x32xf32>
    %304 = vector.extract_strided_slice %302 {offsets = [0, 96], sizes = [2, 32], strides = [1, 1]} : vector<2x128xf32> to vector<2x32xf32>
    %305 = vector.extract_strided_slice %294 {offsets = [0, 64], sizes = [2, 32], strides = [1, 1]} : vector<2x128xf32> to vector<2x32xf32>
    %306 = math.tanh %305 : vector<2x32xf32>
    %307 = arith.mulf %303, %306 : vector<2x32xf32>
    %308 = math.tanh %307 : vector<2x32xf32>
    %309 = arith.mulf %304, %308 : vector<2x32xf32>
    %310 = vector.extract_strided_slice %296 {offsets = [0, 0], sizes = [32, 128], strides = [1, 1]} : vector<64x128xf32> to vector<32x128xf32>
    %cst_56 = arith.constant dense<0.000000e+00> : vector<2x128xf32>
    %311 = tpu.matmul %309, %310, %cst_56 {dimension_numbers = #tpu.dot_dimension_numbers<[1], [0], [0], [1], [0, 0, 1, 1], [], []>} : vector<2x32xf32>, vector<32x128xf32>, vector<2x128xf32> -> vector<2x128xf32>
    %312 = vector.broadcast %297 : vector<1x128xf32> to vector<2x128xf32>
    %313 = arith.addf %311, %312 : vector<2x128xf32>
    %314 = arith.negf %313 : vector<2x128xf32>
    %315 = math.exp %314 : vector<2x128xf32>
    %cst_57 = arith.constant 1.000000e+00 : f32
    %316 = vector.broadcast %cst_57 : f32 to vector<2x128xf32>
    %317 = arith.addf %316, %315 : vector<2x128xf32>
    %318 = arith.divf %316, %317 : vector<2x128xf32>
    %319 = vector.extract_strided_slice %318 {offsets = [0, 0], sizes = [2, 32], strides = [1, 1]} : vector<2x128xf32> to vector<2x32xf32>
    %320 = vector.extract_strided_slice %318 {offsets = [0, 96], sizes = [2, 32], strides = [1, 1]} : vector<2x128xf32> to vector<2x32xf32>
    %321 = vector.extract_strided_slice %313 {offsets = [0, 64], sizes = [2, 32], strides = [1, 1]} : vector<2x128xf32> to vector<2x32xf32>
    %322 = math.tanh %321 : vector<2x32xf32>
    %323 = arith.mulf %319, %322 : vector<2x32xf32>
    %324 = math.tanh %323 : vector<2x32xf32>
    %325 = arith.mulf %320, %324 : vector<2x32xf32>
    %cst_58 = arith.constant dense<0.000000e+00> : vector<2x128xf32>
    %326 = tpu.matmul %309, %295, %cst_58 {dimension_numbers = #tpu.dot_dimension_numbers<[1], [0], [0], [1], [0, 0, 1, 1], [], []>} : vector<2x32xf32>, vector<32x128xf32>, vector<2x128xf32> -> vector<2x128xf32>
    %327 = arith.addf %294, %326 : vector<2x128xf32>
    %328 = arith.negf %327 : vector<2x128xf32>
    %329 = math.exp %328 : vector<2x128xf32>
    %cst_59 = arith.constant 1.000000e+00 : f32
    %330 = vector.broadcast %cst_59 : f32 to vector<2x128xf32>
    %331 = arith.addf %330, %329 : vector<2x128xf32>
    %332 = arith.divf %330, %331 : vector<2x128xf32>
    %333 = vector.extract_strided_slice %332 {offsets = [0, 0], sizes = [2, 32], strides = [1, 1]} : vector<2x128xf32> to vector<2x32xf32>
    %334 = vector.extract_strided_slice %332 {offsets = [0, 32], sizes = [2, 32], strides = [1, 1]} : vector<2x128xf32> to vector<2x32xf32>
    %335 = vector.extract_strided_slice %332 {offsets = [0, 96], sizes = [2, 32], strides = [1, 1]} : vector<2x128xf32> to vector<2x32xf32>
    %336 = vector.extract_strided_slice %327 {offsets = [0, 64], sizes = [2, 32], strides = [1, 1]} : vector<2x128xf32> to vector<2x32xf32>
    %337 = math.tanh %336 : vector<2x32xf32>
    %338 = arith.mulf %334, %307 : vector<2x32xf32>
    %339 = arith.mulf %333, %337 : vector<2x32xf32>
    %340 = arith.addf %338, %339 : vector<2x32xf32>
    %341 = math.tanh %340 : vector<2x32xf32>
    %342 = arith.mulf %335, %341 : vector<2x32xf32>
    %343 = tpu.concatenate %342, %325 in 1 : vector<2x32xf32>, vector<2x32xf32> -> vector<2x64xf32>
    %cst_60 = arith.constant dense<0.000000e+00> : vector<2x128xf32>
    %344 = tpu.matmul %343, %296, %cst_60 {dimension_numbers = #tpu.dot_dimension_numbers<[1], [0], [0], [1], [0, 0, 1, 1], [], []>} : vector<2x64xf32>, vector<64x128xf32>, vector<2x128xf32> -> vector<2x128xf32>
    %345 = vector.broadcast %297 : vector<1x128xf32> to vector<2x128xf32>
    %346 = arith.addf %344, %345 : vector<2x128xf32>
    %347 = arith.negf %346 : vector<2x128xf32>
    %348 = math.exp %347 : vector<2x128xf32>
    %cst_61 = arith.constant 1.000000e+00 : f32
    %349 = vector.broadcast %cst_61 : f32 to vector<2x128xf32>
    %350 = arith.addf %349, %348 : vector<2x128xf32>
    %351 = arith.divf %349, %350 : vector<2x128xf32>
    %352 = vector.extract_strided_slice %351 {offsets = [0, 0], sizes = [2, 32], strides = [1, 1]} : vector<2x128xf32> to vector<2x32xf32>
    %353 = vector.extract_strided_slice %351 {offsets = [0, 32], sizes = [2, 32], strides = [1, 1]} : vector<2x128xf32> to vector<2x32xf32>
    %354 = vector.extract_strided_slice %351 {offsets = [0, 96], sizes = [2, 32], strides = [1, 1]} : vector<2x128xf32> to vector<2x32xf32>
    %355 = vector.extract_strided_slice %346 {offsets = [0, 64], sizes = [2, 32], strides = [1, 1]} : vector<2x128xf32> to vector<2x32xf32>
    %356 = math.tanh %355 : vector<2x32xf32>
    %357 = arith.mulf %353, %323 : vector<2x32xf32>
    %358 = arith.mulf %352, %356 : vector<2x32xf32>
    %359 = arith.addf %357, %358 : vector<2x32xf32>
    %360 = math.tanh %359 : vector<2x32xf32>
    %361 = arith.mulf %354, %360 : vector<2x32xf32>
    %cst_62 = arith.constant dense<0.000000e+00> : vector<2x128xf32>
    %362 = tpu.matmul %342, %295, %cst_62 {dimension_numbers = #tpu.dot_dimension_numbers<[1], [0], [0], [1], [0, 0, 1, 1], [], []>} : vector<2x32xf32>, vector<32x128xf32>, vector<2x128xf32> -> vector<2x128xf32>
    %363 = arith.addf %294, %362 : vector<2x128xf32>
    %364 = arith.negf %363 : vector<2x128xf32>
    %365 = math.exp %364 : vector<2x128xf32>
    %cst_63 = arith.constant 1.000000e+00 : f32
    %366 = vector.broadcast %cst_63 : f32 to vector<2x128xf32>
    %367 = arith.addf %366, %365 : vector<2x128xf32>
    %368 = arith.divf %366, %367 : vector<2x128xf32>
    %369 = vector.extract_strided_slice %368 {offsets = [0, 0], sizes = [2, 32], strides = [1, 1]} : vector<2x128xf32> to vector<2x32xf32>
    %370 = vector.extract_strided_slice %368 {offsets = [0, 32], sizes = [2, 32], strides = [1, 1]} : vector<2x128xf32> to vector<2x32xf32>
    %371 = vector.extract_strided_slice %368 {offsets = [0, 96], sizes = [2, 32], strides = [1, 1]} : vector<2x128xf32> to vector<2x32xf32>
    %372 = vector.extract_strided_slice %363 {offsets = [0, 64], sizes = [2, 32], strides = [1, 1]} : vector<2x128xf32> to vector<2x32xf32>
    %373 = math.tanh %372 : vector<2x32xf32>
    %374 = arith.mulf %370, %340 : vector<2x32xf32>
    %375 = arith.mulf %369, %373 : vector<2x32xf32>
    %376 = arith.addf %374, %375 : vector<2x32xf32>
    %377 = math.tanh %376 : vector<2x32xf32>
    %378 = arith.mulf %371, %377 : vector<2x32xf32>
    %379 = tpu.concatenate %378, %361 in 1 : vector<2x32xf32>, vector<2x32xf32> -> vector<2x64xf32>
    %cst_64 = arith.constant dense<0.000000e+00> : vector<2x128xf32>
    %380 = tpu.matmul %379, %296, %cst_64 {dimension_numbers = #tpu.dot_dimension_numbers<[1], [0], [0], [1], [0, 0, 1, 1], [], []>} : vector<2x64xf32>, vector<64x128xf32>, vector<2x128xf32> -> vector<2x128xf32>
    %381 = vector.broadcast %297 : vector<1x128xf32> to vector<2x128xf32>
    %382 = arith.addf %380, %381 : vector<2x128xf32>
    %383 = arith.negf %382 : vector<2x128xf32>
    %384 = math.exp %383 : vector<2x128xf32>
    %cst_65 = arith.constant 1.000000e+00 : f32
    %385 = vector.broadcast %cst_65 : f32 to vector<2x128xf32>
    %386 = arith.addf %385, %384 : vector<2x128xf32>
    %387 = arith.divf %385, %386 : vector<2x128xf32>
    %388 = vector.extract_strided_slice %387 {offsets = [0, 0], sizes = [2, 32], strides = [1, 1]} : vector<2x128xf32> to vector<2x32xf32>
    %389 = vector.extract_strided_slice %387 {offsets = [0, 32], sizes = [2, 32], strides = [1, 1]} : vector<2x128xf32> to vector<2x32xf32>
    %390 = vector.extract_strided_slice %387 {offsets = [0, 96], sizes = [2, 32], strides = [1, 1]} : vector<2x128xf32> to vector<2x32xf32>
    %391 = vector.extract_strided_slice %382 {offsets = [0, 64], sizes = [2, 32], strides = [1, 1]} : vector<2x128xf32> to vector<2x32xf32>
    %392 = math.tanh %391 : vector<2x32xf32>
    %393 = arith.mulf %389, %359 : vector<2x32xf32>
    %394 = arith.mulf %388, %392 : vector<2x32xf32>
    %395 = arith.addf %393, %394 : vector<2x32xf32>
    %396 = math.tanh %395 : vector<2x32xf32>
    %397 = arith.mulf %390, %396 : vector<2x32xf32>
    %cst_66 = arith.constant dense<0.000000e+00> : vector<2x128xf32>
    %398 = tpu.matmul %378, %295, %cst_66 {dimension_numbers = #tpu.dot_dimension_numbers<[1], [0], [0], [1], [0, 0, 1, 1], [], []>} : vector<2x32xf32>, vector<32x128xf32>, vector<2x128xf32> -> vector<2x128xf32>
    %399 = arith.addf %294, %398 : vector<2x128xf32>
    %400 = arith.negf %399 : vector<2x128xf32>
    %401 = math.exp %400 : vector<2x128xf32>
    %cst_67 = arith.constant 1.000000e+00 : f32
    %402 = vector.broadcast %cst_67 : f32 to vector<2x128xf32>
    %403 = arith.addf %402, %401 : vector<2x128xf32>
    %404 = arith.divf %402, %403 : vector<2x128xf32>
    %405 = vector.extract_strided_slice %404 {offsets = [0, 0], sizes = [2, 32], strides = [1, 1]} : vector<2x128xf32> to vector<2x32xf32>
    %406 = vector.extract_strided_slice %404 {offsets = [0, 32], sizes = [2, 32], strides = [1, 1]} : vector<2x128xf32> to vector<2x32xf32>
    %407 = vector.extract_strided_slice %404 {offsets = [0, 96], sizes = [2, 32], strides = [1, 1]} : vector<2x128xf32> to vector<2x32xf32>
    %408 = vector.extract_strided_slice %399 {offsets = [0, 64], sizes = [2, 32], strides = [1, 1]} : vector<2x128xf32> to vector<2x32xf32>
    %409 = math.tanh %408 : vector<2x32xf32>
    %410 = arith.mulf %406, %376 : vector<2x32xf32>
    %411 = arith.mulf %405, %409 : vector<2x32xf32>
    %412 = arith.addf %410, %411 : vector<2x32xf32>
    %413 = math.tanh %412 : vector<2x32xf32>
    %414 = arith.mulf %407, %413 : vector<2x32xf32>
    %415 = tpu.concatenate %414, %397 in 1 : vector<2x32xf32>, vector<2x32xf32> -> vector<2x64xf32>
    %cst_68 = arith.constant dense<0.000000e+00> : vector<2x128xf32>
    %416 = tpu.matmul %415, %296, %cst_68 {dimension_numbers = #tpu.dot_dimension_numbers<[1], [0], [0], [1], [0, 0, 1, 1], [], []>} : vector<2x64xf32>, vector<64x128xf32>, vector<2x128xf32> -> vector<2x128xf32>
    %417 = vector.broadcast %297 : vector<1x128xf32> to vector<2x128xf32>
    %418 = arith.addf %416, %417 : vector<2x128xf32>
    %419 = arith.negf %418 : vector<2x128xf32>
    %420 = math.exp %419 : vector<2x128xf32>
    %cst_69 = arith.constant 1.000000e+00 : f32
    %421 = vector.broadcast %cst_69 : f32 to vector<2x128xf32>
    %422 = arith.addf %421, %420 : vector<2x128xf32>
    %423 = arith.divf %421, %422 : vector<2x128xf32>
    %424 = vector.extract_strided_slice %423 {offsets = [0, 0], sizes = [2, 32], strides = [1, 1]} : vector<2x128xf32> to vector<2x32xf32>
    %425 = vector.extract_strided_slice %423 {offsets = [0, 32], sizes = [2, 32], strides = [1, 1]} : vector<2x128xf32> to vector<2x32xf32>
    %426 = vector.extract_strided_slice %423 {offsets = [0, 96], sizes = [2, 32], strides = [1, 1]} : vector<2x128xf32> to vector<2x32xf32>
    %427 = vector.extract_strided_slice %418 {offsets = [0, 64], sizes = [2, 32], strides = [1, 1]} : vector<2x128xf32> to vector<2x32xf32>
    %428 = math.tanh %427 : vector<2x32xf32>
    %429 = arith.mulf %425, %395 : vector<2x32xf32>
    %430 = arith.mulf %424, %428 : vector<2x32xf32>
    %431 = arith.addf %429, %430 : vector<2x32xf32>
    %432 = math.tanh %431 : vector<2x32xf32>
    %433 = arith.mulf %426, %432 : vector<2x32xf32>
    %cst_70 = arith.constant dense<0.000000e+00> : vector<2x128xf32>
    %434 = tpu.matmul %414, %295, %cst_70 {dimension_numbers = #tpu.dot_dimension_numbers<[1], [0], [0], [1], [0, 0, 1, 1], [], []>} : vector<2x32xf32>, vector<32x128xf32>, vector<2x128xf32> -> vector<2x128xf32>
    %435 = arith.addf %294, %434 : vector<2x128xf32>
    %436 = arith.negf %435 : vector<2x128xf32>
    %437 = math.exp %436 : vector<2x128xf32>
    %cst_71 = arith.constant 1.000000e+00 : f32
    %438 = vector.broadcast %cst_71 : f32 to vector<2x128xf32>
    %439 = arith.addf %438, %437 : vector<2x128xf32>
    %440 = arith.divf %438, %439 : vector<2x128xf32>
    %441 = vector.extract_strided_slice %440 {offsets = [0, 0], sizes = [2, 32], strides = [1, 1]} : vector<2x128xf32> to vector<2x32xf32>
    %442 = vector.extract_strided_slice %440 {offsets = [0, 32], sizes = [2, 32], strides = [1, 1]} : vector<2x128xf32> to vector<2x32xf32>
    %443 = vector.extract_strided_slice %440 {offsets = [0, 96], sizes = [2, 32], strides = [1, 1]} : vector<2x128xf32> to vector<2x32xf32>
    %444 = vector.extract_strided_slice %435 {offsets = [0, 64], sizes = [2, 32], strides = [1, 1]} : vector<2x128xf32> to vector<2x32xf32>
    %445 = math.tanh %444 : vector<2x32xf32>
    %446 = arith.mulf %442, %412 : vector<2x32xf32>
    %447 = arith.mulf %441, %445 : vector<2x32xf32>
    %448 = arith.addf %446, %447 : vector<2x32xf32>
    %449 = math.tanh %448 : vector<2x32xf32>
    %450 = arith.mulf %443, %449 : vector<2x32xf32>
    %451 = tpu.concatenate %450, %433 in 1 : vector<2x32xf32>, vector<2x32xf32> -> vector<2x64xf32>
    %cst_72 = arith.constant dense<0.000000e+00> : vector<2x128xf32>
    %452 = tpu.matmul %451, %296, %cst_72 {dimension_numbers = #tpu.dot_dimension_numbers<[1], [0], [0], [1], [0, 0, 1, 1], [], []>} : vector<2x64xf32>, vector<64x128xf32>, vector<2x128xf32> -> vector<2x128xf32>
    %453 = vector.broadcast %297 : vector<1x128xf32> to vector<2x128xf32>
    %454 = arith.addf %452, %453 : vector<2x128xf32>
    %455 = arith.negf %454 : vector<2x128xf32>
    %456 = math.exp %455 : vector<2x128xf32>
    %cst_73 = arith.constant 1.000000e+00 : f32
    %457 = vector.broadcast %cst_73 : f32 to vector<2x128xf32>
    %458 = arith.addf %457, %456 : vector<2x128xf32>
    %459 = arith.divf %457, %458 : vector<2x128xf32>
    %460 = vector.extract_strided_slice %459 {offsets = [0, 0], sizes = [2, 32], strides = [1, 1]} : vector<2x128xf32> to vector<2x32xf32>
    %461 = vector.extract_strided_slice %459 {offsets = [0, 32], sizes = [2, 32], strides = [1, 1]} : vector<2x128xf32> to vector<2x32xf32>
    %462 = vector.extract_strided_slice %459 {offsets = [0, 96], sizes = [2, 32], strides = [1, 1]} : vector<2x128xf32> to vector<2x32xf32>
    %463 = vector.extract_strided_slice %454 {offsets = [0, 64], sizes = [2, 32], strides = [1, 1]} : vector<2x128xf32> to vector<2x32xf32>
    %464 = math.tanh %463 : vector<2x32xf32>
    %465 = arith.mulf %461, %431 : vector<2x32xf32>
    %466 = arith.mulf %460, %464 : vector<2x32xf32>
    %467 = arith.addf %465, %466 : vector<2x32xf32>
    %468 = math.tanh %467 : vector<2x32xf32>
    %469 = arith.mulf %462, %468 : vector<2x32xf32>
    %cst_74 = arith.constant dense<0.000000e+00> : vector<2x128xf32>
    %470 = tpu.matmul %450, %295, %cst_74 {dimension_numbers = #tpu.dot_dimension_numbers<[1], [0], [0], [1], [0, 0, 1, 1], [], []>} : vector<2x32xf32>, vector<32x128xf32>, vector<2x128xf32> -> vector<2x128xf32>
    %471 = arith.addf %294, %470 : vector<2x128xf32>
    %472 = arith.negf %471 : vector<2x128xf32>
    %473 = math.exp %472 : vector<2x128xf32>
    %cst_75 = arith.constant 1.000000e+00 : f32
    %474 = vector.broadcast %cst_75 : f32 to vector<2x128xf32>
    %475 = arith.addf %474, %473 : vector<2x128xf32>
    %476 = arith.divf %474, %475 : vector<2x128xf32>
    %477 = vector.extract_strided_slice %476 {offsets = [0, 0], sizes = [2, 32], strides = [1, 1]} : vector<2x128xf32> to vector<2x32xf32>
    %478 = vector.extract_strided_slice %476 {offsets = [0, 32], sizes = [2, 32], strides = [1, 1]} : vector<2x128xf32> to vector<2x32xf32>
    %479 = vector.extract_strided_slice %476 {offsets = [0, 96], sizes = [2, 32], strides = [1, 1]} : vector<2x128xf32> to vector<2x32xf32>
    %480 = vector.extract_strided_slice %471 {offsets = [0, 64], sizes = [2, 32], strides = [1, 1]} : vector<2x128xf32> to vector<2x32xf32>
    %481 = math.tanh %480 : vector<2x32xf32>
    %482 = arith.mulf %478, %448 : vector<2x32xf32>
    %483 = arith.mulf %477, %481 : vector<2x32xf32>
    %484 = arith.addf %482, %483 : vector<2x32xf32>
    %485 = math.tanh %484 : vector<2x32xf32>
    %486 = arith.mulf %479, %485 : vector<2x32xf32>
    %487 = tpu.concatenate %486, %469 in 1 : vector<2x32xf32>, vector<2x32xf32> -> vector<2x64xf32>
    %cst_76 = arith.constant dense<0.000000e+00> : vector<2x128xf32>
    %488 = tpu.matmul %487, %296, %cst_76 {dimension_numbers = #tpu.dot_dimension_numbers<[1], [0], [0], [1], [0, 0, 1, 1], [], []>} : vector<2x64xf32>, vector<64x128xf32>, vector<2x128xf32> -> vector<2x128xf32>
    %489 = vector.broadcast %297 : vector<1x128xf32> to vector<2x128xf32>
    %490 = arith.addf %488, %489 : vector<2x128xf32>
    %491 = arith.negf %490 : vector<2x128xf32>
    %492 = math.exp %491 : vector<2x128xf32>
    %cst_77 = arith.constant 1.000000e+00 : f32
    %493 = vector.broadcast %cst_77 : f32 to vector<2x128xf32>
    %494 = arith.addf %493, %492 : vector<2x128xf32>
    %495 = arith.divf %493, %494 : vector<2x128xf32>
    %496 = vector.extract_strided_slice %495 {offsets = [0, 0], sizes = [2, 32], strides = [1, 1]} : vector<2x128xf32> to vector<2x32xf32>
    %497 = vector.extract_strided_slice %495 {offsets = [0, 32], sizes = [2, 32], strides = [1, 1]} : vector<2x128xf32> to vector<2x32xf32>
    %498 = vector.extract_strided_slice %495 {offsets = [0, 96], sizes = [2, 32], strides = [1, 1]} : vector<2x128xf32> to vector<2x32xf32>
    %499 = vector.extract_strided_slice %490 {offsets = [0, 64], sizes = [2, 32], strides = [1, 1]} : vector<2x128xf32> to vector<2x32xf32>
    %500 = math.tanh %499 : vector<2x32xf32>
    %501 = arith.mulf %497, %467 : vector<2x32xf32>
    %502 = arith.mulf %496, %500 : vector<2x32xf32>
    %503 = arith.addf %501, %502 : vector<2x32xf32>
    %504 = math.tanh %503 : vector<2x32xf32>
    %505 = arith.mulf %498, %504 : vector<2x32xf32>
    %cst_78 = arith.constant dense<0.000000e+00> : vector<2x128xf32>
    %506 = tpu.matmul %486, %295, %cst_78 {dimension_numbers = #tpu.dot_dimension_numbers<[1], [0], [0], [1], [0, 0, 1, 1], [], []>} : vector<2x32xf32>, vector<32x128xf32>, vector<2x128xf32> -> vector<2x128xf32>
    %507 = arith.addf %294, %506 : vector<2x128xf32>
    %508 = arith.negf %507 : vector<2x128xf32>
    %509 = math.exp %508 : vector<2x128xf32>
    %cst_79 = arith.constant 1.000000e+00 : f32
    %510 = vector.broadcast %cst_79 : f32 to vector<2x128xf32>
    %511 = arith.addf %510, %509 : vector<2x128xf32>
    %512 = arith.divf %510, %511 : vector<2x128xf32>
    %513 = vector.extract_strided_slice %512 {offsets = [0, 0], sizes = [2, 32], strides = [1, 1]} : vector<2x128xf32> to vector<2x32xf32>
    %514 = vector.extract_strided_slice %512 {offsets = [0, 32], sizes = [2, 32], strides = [1, 1]} : vector<2x128xf32> to vector<2x32xf32>
    %515 = vector.extract_strided_slice %512 {offsets = [0, 96], sizes = [2, 32], strides = [1, 1]} : vector<2x128xf32> to vector<2x32xf32>
    %516 = vector.extract_strided_slice %507 {offsets = [0, 64], sizes = [2, 32], strides = [1, 1]} : vector<2x128xf32> to vector<2x32xf32>
    %517 = math.tanh %516 : vector<2x32xf32>
    %518 = arith.mulf %514, %484 : vector<2x32xf32>
    %519 = arith.mulf %513, %517 : vector<2x32xf32>
    %520 = arith.addf %518, %519 : vector<2x32xf32>
    %521 = math.tanh %520 : vector<2x32xf32>
    %522 = arith.mulf %515, %521 : vector<2x32xf32>
    %523 = tpu.concatenate %522, %505 in 1 : vector<2x32xf32>, vector<2x32xf32> -> vector<2x64xf32>
    %cst_80 = arith.constant dense<0.000000e+00> : vector<2x128xf32>
    %524 = tpu.matmul %523, %296, %cst_80 {dimension_numbers = #tpu.dot_dimension_numbers<[1], [0], [0], [1], [0, 0, 1, 1], [], []>} : vector<2x64xf32>, vector<64x128xf32>, vector<2x128xf32> -> vector<2x128xf32>
    %525 = vector.broadcast %297 : vector<1x128xf32> to vector<2x128xf32>
    %526 = arith.addf %524, %525 : vector<2x128xf32>
    %527 = arith.negf %526 : vector<2x128xf32>
    %528 = math.exp %527 : vector<2x128xf32>
    %cst_81 = arith.constant 1.000000e+00 : f32
    %529 = vector.broadcast %cst_81 : f32 to vector<2x128xf32>
    %530 = arith.addf %529, %528 : vector<2x128xf32>
    %531 = arith.divf %529, %530 : vector<2x128xf32>
    %532 = vector.extract_strided_slice %531 {offsets = [0, 0], sizes = [2, 32], strides = [1, 1]} : vector<2x128xf32> to vector<2x32xf32>
    %533 = vector.extract_strided_slice %531 {offsets = [0, 32], sizes = [2, 32], strides = [1, 1]} : vector<2x128xf32> to vector<2x32xf32>
    %534 = vector.extract_strided_slice %531 {offsets = [0, 96], sizes = [2, 32], strides = [1, 1]} : vector<2x128xf32> to vector<2x32xf32>
    %535 = vector.extract_strided_slice %526 {offsets = [0, 64], sizes = [2, 32], strides = [1, 1]} : vector<2x128xf32> to vector<2x32xf32>
    %536 = math.tanh %535 : vector<2x32xf32>
    %537 = arith.mulf %533, %503 : vector<2x32xf32>
    %538 = arith.mulf %532, %536 : vector<2x32xf32>
    %539 = arith.addf %537, %538 : vector<2x32xf32>
    %540 = math.tanh %539 : vector<2x32xf32>
    %541 = arith.mulf %534, %540 : vector<2x32xf32>
    %cst_82 = arith.constant dense<0.000000e+00> : vector<2x128xf32>
    %542 = tpu.matmul %522, %295, %cst_82 {dimension_numbers = #tpu.dot_dimension_numbers<[1], [0], [0], [1], [0, 0, 1, 1], [], []>} : vector<2x32xf32>, vector<32x128xf32>, vector<2x128xf32> -> vector<2x128xf32>
    %543 = arith.addf %294, %542 : vector<2x128xf32>
    %544 = arith.negf %543 : vector<2x128xf32>
    %545 = math.exp %544 : vector<2x128xf32>
    %cst_83 = arith.constant 1.000000e+00 : f32
    %546 = vector.broadcast %cst_83 : f32 to vector<2x128xf32>
    %547 = arith.addf %546, %545 : vector<2x128xf32>
    %548 = arith.divf %546, %547 : vector<2x128xf32>
    %549 = vector.extract_strided_slice %548 {offsets = [0, 0], sizes = [2, 32], strides = [1, 1]} : vector<2x128xf32> to vector<2x32xf32>
    %550 = vector.extract_strided_slice %548 {offsets = [0, 32], sizes = [2, 32], strides = [1, 1]} : vector<2x128xf32> to vector<2x32xf32>
    %551 = vector.extract_strided_slice %548 {offsets = [0, 96], sizes = [2, 32], strides = [1, 1]} : vector<2x128xf32> to vector<2x32xf32>
    %552 = vector.extract_strided_slice %543 {offsets = [0, 64], sizes = [2, 32], strides = [1, 1]} : vector<2x128xf32> to vector<2x32xf32>
    %553 = math.tanh %552 : vector<2x32xf32>
    %554 = arith.mulf %550, %520 : vector<2x32xf32>
    %555 = arith.mulf %549, %553 : vector<2x32xf32>
    %556 = arith.addf %554, %555 : vector<2x32xf32>
    %557 = math.tanh %556 : vector<2x32xf32>
    %558 = arith.mulf %551, %557 : vector<2x32xf32>
    %559 = tpu.concatenate %558, %541 in 1 : vector<2x32xf32>, vector<2x32xf32> -> vector<2x64xf32>
    %cst_84 = arith.constant dense<0.000000e+00> : vector<2x128xf32>
    %560 = tpu.matmul %559, %296, %cst_84 {dimension_numbers = #tpu.dot_dimension_numbers<[1], [0], [0], [1], [0, 0, 1, 1], [], []>} : vector<2x64xf32>, vector<64x128xf32>, vector<2x128xf32> -> vector<2x128xf32>
    %561 = vector.broadcast %297 : vector<1x128xf32> to vector<2x128xf32>
    %562 = arith.addf %560, %561 : vector<2x128xf32>
    %563 = arith.negf %562 : vector<2x128xf32>
    %564 = math.exp %563 : vector<2x128xf32>
    %cst_85 = arith.constant 1.000000e+00 : f32
    %565 = vector.broadcast %cst_85 : f32 to vector<2x128xf32>
    %566 = arith.addf %565, %564 : vector<2x128xf32>
    %567 = arith.divf %565, %566 : vector<2x128xf32>
    %568 = vector.extract_strided_slice %567 {offsets = [0, 0], sizes = [2, 32], strides = [1, 1]} : vector<2x128xf32> to vector<2x32xf32>
    %569 = vector.extract_strided_slice %567 {offsets = [0, 32], sizes = [2, 32], strides = [1, 1]} : vector<2x128xf32> to vector<2x32xf32>
    %570 = vector.extract_strided_slice %567 {offsets = [0, 96], sizes = [2, 32], strides = [1, 1]} : vector<2x128xf32> to vector<2x32xf32>
    %571 = vector.extract_strided_slice %562 {offsets = [0, 64], sizes = [2, 32], strides = [1, 1]} : vector<2x128xf32> to vector<2x32xf32>
    %572 = math.tanh %571 : vector<2x32xf32>
    %573 = arith.mulf %569, %539 : vector<2x32xf32>
    %574 = arith.mulf %568, %572 : vector<2x32xf32>
    %575 = arith.addf %573, %574 : vector<2x32xf32>
    %576 = math.tanh %575 : vector<2x32xf32>
    %577 = arith.mulf %570, %576 : vector<2x32xf32>
    %578 = tpu.concatenate %290, %325, %361, %397, %433, %469, %505, %541, %577 in 1 : vector<2x32xf32>, vector<2x32xf32>, vector<2x32xf32>, vector<2x32xf32>, vector<2x32xf32>, vector<2x32xf32>, vector<2x32xf32>, vector<2x32xf32>, vector<2x32xf32> -> vector<2x288xf32>
    %c0_86 = arith.constant 0 : index
    %c0_87 = arith.constant 0 : index
    %579 = vector.load %arg9[%c0_86, %c0_87] : memref<2x288xf32, #tpu.memory_space<vmem>>, vector<2x288xf32>
    tpu.vector_store %arg9[%c0_86, %c0_87], %578 {strides = array<i32>} : memref<2x288xf32, #tpu.memory_space<vmem>>, vector<2x288xf32>,
    return
  }
}

</mosaic_0001>

<bundles_post_ra>
// kernel: crae_forward.1
= control target key start
LH: loop header
LB: loop body
LE: loop exit
PB: predicated region body
PF: predicated region fallthrough
CT: control target
= control target key end

     0   :  { %s4547_s11 = smov 64   ;;  %v4548_v8 = vmov 0.0|0.0   ;;  %vm4549_vm0 = vmmov 0   ;;  %v4550_v16 = vmov 0.0   ;;  %s4552_s28 = smov 32   ;;  %vm73_vm1 = vcmask 261120   ;;  %s5299_s0 = inlined_call_operand.vmem [shape: f32[16,128], index: 0, kind: input, shape index: {}]   ;;  %s5300_s2 = inlined_call_operand.vmem [shape: f32[64,128], index: 2, kind: input, shape index: {}]   ;;  %s5301_s1 = inlined_call_operand.vmem [shape: f32[32,128], index: 1, kind: input, shape index: {}]   ;;  %s5302_s3 = inlined_call_operand.vmem [shape: f32[1,128], index: 3, kind: input, shape index: {}]   ;;  %s5303_s4 = inlined_call_operand.vmem [shape: f32[32,128], index: 4, kind: input, shape index: {}]   ;;  %s5304_s5 = inlined_call_operand.vmem [shape: f32[2,128], index: 5, kind: input, shape index: {}]   ;;  %s5305_s7 = inlined_call_operand.vmem [shape: f32[64,128], index: 7, kind: input, shape index: {}]   ;;  %s5306_s6 = inlined_call_operand.vmem [shape: f32[32,128], index: 6, kind: input, shape index: {}]   ;;  %s5307_s8 = inlined_call_operand.vmem [shape: f32[1,128], index: 8, kind: input, shape index: {}]   ;;  %s5308_s9 = inlined_call_operand.vmem [shape: f32[2,288], index: 9, kind: output, shape index: {}]  }
   0x1   :  { %v45_v0 = vld [vmem:[%s5299_s0] sm:$0x3]  ;;  %4014 = vmatprep.subr.bf16.mxu0 %v4548_v8  ;;  %4020 = vmatprep.subr.bf16.mxu1 %v4548_v8  ;;  %v37_v10 = vld [vmem:[%s5300_s2 + $0x8] sm:$0xff]  ;;  %v38_v14 = vld [vmem:[%s5300_s2 + $0x10] sm:$0xff]  ;;  %vm273_vm2 = vcmask 523264   ;;  %vm3251_vm3 = vcmask 785408  }
   0x2   :  { %4291 = vtanh.f32 %v45_v0  ;;  %v3285_v2 = vmul.f32 -1.442695, %v45_v0  ;;  %v36_v9 = vld [vmem:[%s5300_s2] sm:$0xff]  ;;  %v33_v13 = vld [vmem:[%s5301_s1 + $0x8] sm:$0xff]  ;;  %v39_v15 = vld [vmem:[%s5300_s2 + $0x18] sm:$0xff]  ;;  %3569 = vmatprep.mubr.msk.f32.mxu0 %vm4549_vm0, %v4550_v16  ;;  %3580 = vmatprep.mubr.msk.f32.mxu1 %vm4549_vm0, %v4550_v16  ;;  %vm3275_vm4 = vcmask 1041408  }
   0x3   :  { %v32_v11 = vld [vmem:[%s5301_s1] sm:$0xff]  ;;  %v4619_v12 = vpack.c.bf16 %v37_v10, %v36_v9  ;;  %v34_v18 = vld [vmem:[%s5301_s1 + $0x10] sm:$0xff]  ;;  %v35_v19 = vld [vmem:[%s5301_s1 + $0x18] sm:$0xff]  ;;  %v4643_v20 = vpack.c.bf16 %v39_v15, %v38_v14  ;;  %s4551_s1 = smov 96   ;;  %vm3276_vm5 = vcmask 1043458   ;;  %vm3278_vm7 = vcmask 259076  }
   0x4   :  { %4293 = vpow2.f32 %v3285_v2  ;;  %v4634_v17 = vpack.c.bf16 %v33_v13, %v32_v11  ;;  %v4647_v21 = vpack.c.bf16 %v35_v19, %v34_v18  ;;  %v164_v26 = vld [vmem:[%s5299_s0 + $0x2] sm:$0x3]  ;;  %v4677_v29 = vld [vmem:[%s5302_s3] ss:$0 sm:$0xff]  ;;  %v41_v54 = vld [vmem:[%s5300_s2 + $0x28] sm:$0xff] }
   0x5   :  { %4016 = vmatpush3.bf16.msra.mxu0 %v4619_v12  ;;  %v40_v53 = vld [vmem:[%s5300_s2 + $0x20] sm:$0xff]  ;;  %v42_v55 = vld [vmem:[%s5300_s2 + $0x30] sm:$0xff]  ;;  %v43_v57 = vld [vmem:[%s5300_s2 + $0x38] sm:$0xff] }
   0x6   :  { %4022 = vmatpush3.bf16.msra.mxu1 %v4634_v17  ;;  %4017 = vmatprep.subr.bf16.mxu0 %v4548_v8  ;;  %v4696_v56 = vpack.c.bf16 %v41_v54, %v40_v53  ;;  %v4702_v58 = vpack.c.bf16 %v43_v57, %v42_v55  ;;  %vm3277_vm6 = vmor %vm3276_vm5, %vm3275_vm4 }
   0x7   :  { %4023 = vmatprep.subr.bf16.mxu1 %v4548_v8  ;;  %vm3279_vm8 = vmor %vm3278_vm7, %vm3277_vm6 }
   0x9   :  { %4019 = vmatpush3.bf16.msra.mxu0 %v4643_v20 }
   0xa   :  { %4025 = vmatpush3.bf16.msra.mxu1 %v4647_v21  ;;  %4026 = vmatprep.subr.bf16.mxu0 %v4548_v8 }
   0xb   :  { %4038 = vmatprep.subr.bf16.mxu1 %v4548_v8 }
   0xc   :  { %v4292_v1 = vpop.eup %4291 }
   0xd   :  { %54 = vrot.lane.b32.xlu0 %v4292_v1, %s4547_s11 }
   0xe   :  { %v4294_v3 = vpop.eup %4293 }
   0xf   :  { %v49_v4 = vadd.f32 1.0, %v4294_v3  ;;  %v375_v3 = vld [vmem:[%s5299_s0 + $0x4] sm:$0x3] }
  0x11   :  { %4295 = vrcp.f32 %v49_v4 }
  0x1b   :  { %v4296_v5 = vpop.eup %4295 }
  0x7f   :  { %v55_v6 = vpop.permute.xlu0 %54 }
  0x80   :  { %v57_v7 = vmul.f32 %v4296_v5, %v55_v6 }
  0x82   :  { %4297 = vtanh.f32 %v57_v7 }
  0x8c   :  { %v4298_v22 = vpop.eup %4297 }
  0x8d   :  { %60 = vrot.lane.b32.xlu0 %v4298_v22, %s4551_s1 }
  0x91   :  { %244 = vrot.lane.b32.xlu0 %v57_v7, %s4552_s28 }
  0xff   :  { %v61_v23 = vpop.permute.xlu0 %60 }
 0x100   :  { %v63_v24 = vmul.f32 %v4296_v5, %v61_v23 }
 0x102   :  { %71 = vrot.lane.b32.xlu1 %v63_v24, %s4552_s28 }
 0x103   :  { %v245_v49 = vpop.permute.xlu0 %244 }
 0x174   :  { %v72_v25 = vpop.permute.xlu1 %71 }
 0x175   :  { %3570 = vmatmul.mubr.msk.f32.vlgmr.msra.gmra.mrb[0].mxu0 %vm73_vm1, %v72_v25  ;;  %3581 = vmatmul.mubr.msk.f32.vlgmr.msra.gmra.mrb[0].mxu1 %vm73_vm1, %v72_v25 }
 0x176   :  { %4028 = vmatpush3.bf16.msra.mxu0 %v4619_v12  ;;  %4040 = vmatpush3.bf16.msra.mxu1 %v4634_v17 }
 0x177   :  { %4029 = vmatprep.subr.bf16.mxu0 %v4548_v8  ;;  %4041 = vmatprep.subr.bf16.mxu1 %v4548_v8 }
 0x178   :  { %3610 = vmatprep.mubr.msk.f32.mxu1 %vm4549_vm0, %v4550_v16  ;;  %3599 = vmatprep.mubr.msk.f32.mxu0 %vm4549_vm0, %v4550_v16 }
 0x17a   :  { %4031 = vmatpush3.bf16.msra.mxu0 %v4643_v20  ;;  %4043 = vmatpush3.bf16.msra.mxu1 %v4647_v21 }
 0x17b   :  { %4032 = vmatprep.subr.bf16.mxu0 %v4548_v8  ;;  %4044 = vmatprep.subr.bf16.mxu1 %v4548_v8 }
 0x17e   :  { %4034 = vmatpush3.bf16.msra.mxu0 %v4696_v56 }
 0x17f   :  { %4035 = vmatprep.subr.bf16.mxu0 %v4548_v8 }
 0x182   :  { %4037 = vmatpush3.bf16.msra.mxu0 %v4702_v58 }
 0x183   :  { %4056 = vmatprep.subr.bf16.mxu0 %v4548_v8 }
 0x248   :  { %v142_v27 = vpop.f32.mrb[0].mxu0  ;;  %v231_v28 = vpop.f32.mrb[0].mxu1 }
 0x249   :  { %v235_v30 = vadd.f32 %v231_v28, %v164_v26  ;;  %v3571_v31 = vpop.f32.mrb[1].mxu0  ;;  %v3582_v32 = vpop.f32.mrb[1].mxu1  ;;  %v143_v33 = vadd.f32 %v4677_v29, %v142_v27 }
 0x24b   :  { %4299 = vtanh.f32 %v235_v30  ;;  %v3290_v36 = vmul.f32 -1.442695, %v235_v30  ;;  %v3288_v37 = vmul.f32 -1.442695, %v143_v33 }
 0x24c   :  { %4301 = vtanh.f32 %v143_v33 }
 0x24d   :  { %4303 = vpow2.f32 %v3290_v36 }
 0x24e   :  { %4305 = vpow2.f32 %v3288_v37 }
 0x255   :  { %v4300_v34 = vpop.eup %4299 }
 0x256   :  { %249 = vrot.lane.b32.xlu1 %v4300_v34, %s4547_s11  ;;  %v4302_v35 = vpop.eup %4301 }
 0x257   :  { %v4304_v38 = vpop.eup %4303 }
 0x258   :  { %v239_v39 = vadd.f32 1.0, %v4304_v38  ;;  %v4306_v40 = vpop.eup %4305 }
 0x259   :  { %v149_v41 = vadd.f32 1.0, %v4306_v40 }
 0x25a   :  { %154 = vrot.lane.b32.xlu1 %v4302_v35, %s4547_s11  ;;  %4307 = vrcp.f32 %v239_v39 }
 0x25b   :  { %4309 = vrcp.f32 %v149_v41 }
 0x264   :  { %v4308_v42 = vpop.eup %4307 }
 0x265   :  { %v4310_v45 = vpop.eup %4309  ;;  %v247_v50 = vmul.f32 %v4308_v42, %v245_v49 }
 0x2c8   :  { %v250_v43 = vpop.permute.xlu1 %249 }
 0x2c9   :  { %v252_v44 = vmul.f32 %v4308_v42, %v250_v43 }
 0x2cb   :  { %254 = vrot.lane.b32.xlu0 %v252_v44, %s4552_s28 }
 0x2cc   :  { %v155_v46 = vpop.permute.xlu1 %154 }
 0x2cd   :  { %v157_v47 = vmul.f32 %v4310_v45, %v155_v46 }
 0x2cf   :  { %4311 = vtanh.f32 %v157_v47 }
 0x2d9   :  { %v4312_v48 = vpop.eup %4311 }
 0x2da   :  { %160 = vrot.lane.b32.xlu1 %v4312_v48, %s4551_s1 }
 0x33d   :  { %v255_v51 = vpop.permute.xlu0 %254 }
 0x33e   :  { %v4684_v52 = vadd.f32 %v255_v51, %v247_v50 }
 0x340   :  { %4313 = vtanh.f32 %v4684_v52 }
 0x34a   :  { %v4314_v59 = vpop.eup %4313 }
 0x34b   :  { %260 = vrot.lane.b32.xlu0 %v4314_v59, %s4547_s11 }
 0x34c   :  { %v161_v60 = vpop.permute.xlu1 %160 }
 0x34d   :  { %v163_v61 = vmul.f32 %v4310_v45, %v161_v60 }
 0x34f   :  { %269 = vrot.lane.b32.xlu0 %v163_v61, %s4547_s11 }
 0x3bd   :  { %v261_v62 = vpop.permute.xlu0 %260 }
 0x3be   :  { %v263_v63 = vmul.f32 %v4308_v42, %v261_v62 }
 0x3c0   :  { %265 = vrot.lane.b32.xlu1 %v263_v63, %s4552_s28 }
 0x3c1   :  { %v270_v0 = vpop.permute.xlu0 %269 }
 0x432   :  { %v266_v1 = vpop.permute.xlu1 %265 }
 0x433   :  { %v272_v2 = vsel %vm73_vm1, %v266_v1, %v270_v0  ;;  %3611 = vmatmul.mubr.msk.f32.vlgmr.msra.gmra.mrb[2].mxu1 %vm73_vm1, %v266_v1 }
 0x434   :  { %3600 = vmatmul.mubr.msk.f32.vlgmr.msra.gmra.mrb[2].mxu0 %vm273_vm2, %v272_v2  ;;  %4046 = vmatpush3.bf16.msra.mxu1 %v4619_v12 }
 0x435   :  { %4047 = vmatprep.subr.bf16.mxu1 %v4548_v8  ;;  %4058 = vmatpush3.bf16.msra.mxu0 %v4634_v17 }
 0x436   :  { %4059 = vmatprep.subr.bf16.mxu0 %v4548_v8  ;;  %3640 = vmatprep.mubr.msk.f32.mxu0 %vm4549_vm0, %v4550_v16 }
 0x437   :  { %3629 = vmatprep.mubr.msk.f32.mxu1 %vm4549_vm0, %v4550_v16 }
 0x438   :  { %4049 = vmatpush3.bf16.msra.mxu1 %v4643_v20 }
 0x439   :  { %4050 = vmatprep.subr.bf16.mxu1 %v4548_v8  ;;  %4061 = vmatpush3.bf16.msra.mxu0 %v4647_v21 }
 0x43a   :  { %4062 = vmatprep.subr.bf16.mxu0 %v4548_v8 }
 0x43c   :  { %4052 = vmatpush3.bf16.msra.mxu1 %v4696_v56 }
 0x43d   :  { %4053 = vmatprep.subr.bf16.mxu1 %v4548_v8 }
 0x440   :  { %4055 = vmatpush3.bf16.msra.mxu1 %v4702_v58 }
 0x441   :  { %4074 = vmatprep.subr.bf16.mxu1 %v4548_v8 }
 0x506   :  { %v444_v4 = vpop.f32.mrb[2].mxu1 }
 0x507   :  { %v448_v5 = vadd.f32 %v444_v4, %v375_v3  ;;  %v343_v6 = vpop.f32.mrb[2].mxu0  ;;  %v3612_v7 = vpop.f32.mrb[3].mxu1 }
 0x508   :  { %v344_v9 = vadd.f32 %v4677_v29, %v343_v6  ;;  %v3601_v10 = vpop.f32.mrb[3].mxu0 }
 0x509   :  { %4315 = vtanh.f32 %v448_v5  ;;  %v3294_v14 = vmul.f32 -1.442695, %v448_v5 }
 0x50a   :  { %4317 = vtanh.f32 %v344_v9  ;;  %v3292_v15 = vmul.f32 -1.442695, %v344_v9 }
 0x50b   :  { %4319 = vpow2.f32 %v3294_v14 }
 0x50c   :  { %4321 = vpow2.f32 %v3292_v15 }
 0x513   :  { %v4316_v11 = vpop.eup %4315 }
 0x514   :  { %v4318_v13 = vpop.eup %4317  ;;  %458 = vrot.lane.b32.xlu0 %v4316_v11, %s4547_s11 }
 0x515   :  { %360 = vrot.lane.b32.xlu1 %v4318_v13, %s4547_s11  ;;  %v4320_v18 = vpop.eup %4319 }
 0x516   :  { %v4322_v19 = vpop.eup %4321  ;;  %v452_v22 = vadd.f32 1.0, %v4320_v18 }
 0x517   :  { %v350_v23 = vadd.f32 1.0, %v4322_v19 }
 0x518   :  { %4323 = vrcp.f32 %v452_v22 }
 0x519   :  { %355 = vrot.lane.b32.xlu1 %v157_v47, %s4552_s28  ;;  %4325 = vrcp.f32 %v350_v23  ;;  %v579_v47 = vld [vmem:[%s5299_s0 + $0x6] sm:$0x3] }
 0x522   :  { %v4324_v24 = vpop.eup %4323 }
 0x523   :  { %v4326_v26 = vpop.eup %4325  ;;  %v456_v32 = vmul.f32 %v4324_v24, %v4684_v52 }
 0x586   :  { %v459_v25 = vpop.permute.xlu0 %458 }
 0x587   :  { %v461_v27 = vmul.f32 %v4324_v24, %v459_v25  ;;  %v361_v28 = vpop.permute.xlu1 %360 }
 0x588   :  { %v363_v30 = vmul.f32 %v4326_v26, %v361_v28 }
 0x589   :  { %463 = vrot.lane.b32.xlu1 %v461_v27, %s4552_s28  ;;  %v783_v27 = vld [vmem:[%s5299_s0 + $0x8] sm:$0x3] }
 0x58a   :  { %365 = vrot.lane.b32.xlu0 %v363_v30, %s4552_s28 }
 0x58b   :  { %v356_v31 = vpop.permute.xlu1 %355 }
 0x58c   :  { %v358_v33 = vmul.f32 %v4326_v26, %v356_v31 }
 0x5fb   :  { %v464_v34 = vpop.permute.xlu1 %463 }
 0x5fc   :  { %v4739_v35 = vadd.f32 %v464_v34, %v456_v32  ;;  %v366_v36 = vpop.permute.xlu0 %365 }
 0x5fd   :  { %v4741_v37 = vadd.f32 %v366_v36, %v358_v33 }
 0x5fe   :  { %4327 = vtanh.f32 %v4739_v35 }
 0x5ff   :  { %4329 = vtanh.f32 %v4741_v37 }
 0x608   :  { %v4328_v38 = vpop.eup %4327 }
 0x609   :  { %v4330_v39 = vpop.eup %4329  ;;  %469 = vrot.lane.b32.xlu1 %v4328_v38, %s4547_s11 }
 0x60a   :  { %371 = vrot.lane.b32.xlu0 %v4330_v39, %s4547_s11 }
 0x67b   :  { %v470_v40 = vpop.permute.xlu1 %469 }
 0x67c   :  { %v472_v41 = vmul.f32 %v4324_v24, %v470_v40  ;;  %v372_v42 = vpop.permute.xlu0 %371 }
 0x67d   :  { %v374_v43 = vmul.f32 %v4326_v26, %v372_v42 }
 0x67e   :  { %474 = vrot.lane.b32.xlu0 %v472_v41, %s4552_s28 }
 0x67f   :  { %478 = vrot.lane.b32.xlu1 %v374_v43, %s4547_s11 }
 0x6f0   :  { %v475_v44 = vpop.permute.xlu0 %474 }
 0x6f1   :  { %v479_v45 = vpop.permute.xlu1 %478  ;;  %3641 = vmatmul.mubr.msk.f32.vlgmr.msra.gmra.mrb[4].mxu0 %vm73_vm1, %v475_v44 }
 0x6f2   :  { %v481_v46 = vsel %vm73_vm1, %v475_v44, %v479_v45  ;;  %4064 = vmatpush3.bf16.msra.mxu0 %v4619_v12  ;;  %3659 = vmatprep.mubr.msk.f32.mxu0 %vm4549_vm0, %v4550_v16 }
 0x6f3   :  { %3630 = vmatmul.mubr.msk.f32.vlgmr.msra.gmra.mrb[4].mxu1 %vm273_vm2, %v481_v46  ;;  %4065 = vmatprep.subr.bf16.mxu0 %v4548_v8 }
 0x6f4   :  { %4076 = vmatpush3.bf16.msra.mxu1 %v4634_v17  ;;  %3670 = vmatprep.mubr.msk.f32.mxu1 %vm4549_vm0, %v4550_v16 }
 0x6f5   :  { %4077 = vmatprep.subr.bf16.mxu1 %v4548_v8 }
 0x6f6   :  { %4067 = vmatpush3.bf16.msra.mxu0 %v4643_v20 }
 0x6f7   :  { %4068 = vmatprep.subr.bf16.mxu0 %v4548_v8 }
 0x6f8   :  { %4079 = vmatpush3.bf16.msra.mxu1 %v4647_v21 }
 0x6f9   :  { %4080 = vmatprep.subr.bf16.mxu1 %v4548_v8 }
 0x6fa   :  { %4070 = vmatpush3.bf16.msra.mxu0 %v4696_v56 }
 0x6fb   :  { %4071 = vmatprep.subr.bf16.mxu0 %v4548_v8 }
 0x6fe   :  { %4073 = vmatpush3.bf16.msra.mxu0 %v4702_v58 }
 0x6ff   :  { %4092 = vmatprep.subr.bf16.mxu0 %v4548_v8 }
 0x7c4   :  { %v648_v48 = vpop.f32.mrb[4].mxu0 }
 0x7c5   :  { %v652_v49 = vadd.f32 %v648_v48, %v579_v47  ;;  %v3642_v50 = vpop.f32.mrb[5].mxu0 }
 0x7c6   :  { %v551_v51 = vpop.f32.mrb[4].mxu1 }
 0x7c7   :  { %4331 = vtanh.f32 %v652_v49  ;;  %v552_v52 = vadd.f32 %v4677_v29, %v551_v51  ;;  %v3631_v53 = vpop.f32.mrb[5].mxu1  ;;  %v3298_v57 = vmul.f32 -1.442695, %v652_v49 }
 0x7c9   :  { %4333 = vtanh.f32 %v552_v52  ;;  %v3296_v59 = vmul.f32 -1.442695, %v552_v52 }
 0x7ca   :  { %4335 = vpow2.f32 %v3298_v57 }
 0x7cb   :  { %4337 = vpow2.f32 %v3296_v59 }
 0x7d1   :  { %v4332_v54 = vpop.eup %4331 }
 0x7d2   :  { %662 = vrot.lane.b32.xlu1 %v4332_v54, %s4547_s11 }
 0x7d3   :  { %v4334_v55 = vpop.eup %4333 }
 0x7d4   :  { %564 = vrot.lane.b32.xlu0 %v4334_v55, %s4547_s11  ;;  %v4336_v60 = vpop.eup %4335 }
 0x7d5   :  { %v4338_v61 = vpop.eup %4337  ;;  %v656_v62 = vadd.f32 1.0, %v4336_v60 }
 0x7d6   :  { %v558_v63 = vadd.f32 1.0, %v4338_v61 }
 0x7d7   :  { %4339 = vrcp.f32 %v656_v62 }
 0x7d8   :  { %4341 = vrcp.f32 %v558_v63 }
 0x7e1   :  { %v4340_v0 = vpop.eup %4339 }
 0x7e2   :  { %v4342_v3 = vpop.eup %4341  ;;  %v660_v6 = vmul.f32 %v4340_v0, %v4739_v35 }
 0x7e3   :  { %v562_v10 = vmul.f32 %v4342_v3, %v4741_v37 }
 0x844   :  { %v663_v1 = vpop.permute.xlu1 %662 }
 0x845   :  { %v665_v2 = vmul.f32 %v4340_v0, %v663_v1 }
 0x846   :  { %v565_v4 = vpop.permute.xlu0 %564 }
 0x847   :  { %667 = vrot.lane.b32.xlu1 %v665_v2, %s4552_s28  ;;  %v567_v5 = vmul.f32 %v4342_v3, %v565_v4  ;;  %v987_v2 = vld [vmem:[%s5299_s0 + $0xa] sm:$0x3] }
 0x849   :  { %569 = vrot.lane.b32.xlu0 %v567_v5, %s4552_s28 }
 0x8b9   :  { %v668_v7 = vpop.permute.xlu1 %667 }
 0x8ba   :  { %v4777_v9 = vadd.f32 %v668_v7, %v660_v6 }
 0x8bb   :  { %v570_v11 = vpop.permute.xlu0 %569 }
 0x8bc   :  { %4343 = vtanh.f32 %v4777_v9  ;;  %v4781_v13 = vadd.f32 %v570_v11, %v562_v10 }
 0x8be   :  { %4345 = vtanh.f32 %v4781_v13 }
 0x8c6   :  { %v4344_v14 = vpop.eup %4343 }
 0x8c7   :  { %673 = vrot.lane.b32.xlu1 %v4344_v14, %s4547_s11 }
 0x8c8   :  { %v4346_v15 = vpop.eup %4345 }
 0x8c9   :  { %575 = vrot.lane.b32.xlu0 %v4346_v15, %s4547_s11 }
 0x939   :  { %v674_v18 = vpop.permute.xlu1 %673 }
 0x93a   :  { %v676_v19 = vmul.f32 %v4340_v0, %v674_v18 }
 0x93b   :  { %v576_v22 = vpop.permute.xlu0 %575 }
 0x93c   :  { %678 = vrot.lane.b32.xlu0 %v676_v19, %s4552_s28  ;;  %v578_v23 = vmul.f32 %v4342_v3, %v576_v22 }
 0x93e   :  { %682 = vrot.lane.b32.xlu1 %v578_v23, %s4547_s11 }
 0x9ae   :  { %v679_v24 = vpop.permute.xlu0 %678 }
 0x9af   :  { %3671 = vmatmul.mubr.msk.f32.vlgmr.msra.gmra.mrb[6].mxu1 %vm73_vm1, %v679_v24 }
 0x9b0   :  { %4082 = vmatpush3.bf16.msra.mxu1 %v4619_v12  ;;  %3689 = vmatprep.mubr.msk.f32.mxu1 %vm4549_vm0, %v4550_v16  ;;  %v683_v25 = vpop.permute.xlu1 %682 }
 0x9b1   :  { %4083 = vmatprep.subr.bf16.mxu1 %v4548_v8  ;;  %v685_v26 = vsel %vm73_vm1, %v679_v24, %v683_v25 }
 0x9b2   :  { %3660 = vmatmul.mubr.msk.f32.vlgmr.msra.gmra.mrb[6].mxu0 %vm273_vm2, %v685_v26 }
 0x9b3   :  { %4094 = vmatpush3.bf16.msra.mxu0 %v4634_v17  ;;  %3700 = vmatprep.mubr.msk.f32.mxu0 %vm4549_vm0, %v4550_v16 }
 0x9b4   :  { %4085 = vmatpush3.bf16.msra.mxu1 %v4643_v20  ;;  %4095 = vmatprep.subr.bf16.mxu0 %v4548_v8 }
 0x9b5   :  { %4086 = vmatprep.subr.bf16.mxu1 %v4548_v8 }
 0x9b7   :  { %4097 = vmatpush3.bf16.msra.mxu0 %v4647_v21 }
 0x9b8   :  { %4088 = vmatpush3.bf16.msra.mxu1 %v4696_v56  ;;  %4098 = vmatprep.subr.bf16.mxu0 %v4548_v8 }
 0x9b9   :  { %4089 = vmatprep.subr.bf16.mxu1 %v4548_v8 }
 0x9bc   :  { %4091 = vmatpush3.bf16.msra.mxu1 %v4702_v58 }
 0x9bd   :  { %4110 = vmatprep.subr.bf16.mxu1 %v4548_v8 }
 0xa82   :  { %v852_v28 = vpop.f32.mrb[6].mxu1 }
 0xa83   :  { %v856_v30 = vadd.f32 %v852_v28, %v783_v27  ;;  %v3672_v31 = vpop.f32.mrb[7].mxu1 }
 0xa85   :  { %4347 = vtanh.f32 %v856_v30  ;;  %v755_v32 = vpop.f32.mrb[6].mxu0  ;;  %v3302_v37 = vmul.f32 -1.442695, %v856_v30 }
 0xa86   :  { %v756_v33 = vadd.f32 %v4677_v29, %v755_v32  ;;  %v3661_v34 = vpop.f32.mrb[7].mxu0 }
 0xa88   :  { %4349 = vtanh.f32 %v756_v33  ;;  %v3300_v38 = vmul.f32 -1.442695, %v756_v33 }
 0xa89   :  { %4351 = vpow2.f32 %v3302_v37 }
 0xa8a   :  { %4353 = vpow2.f32 %v3300_v38 }
 0xa8f   :  { %v4348_v35 = vpop.eup %4347 }
 0xa90   :  { %866 = vrot.lane.b32.xlu1 %v4348_v35, %s4547_s11 }
 0xa92   :  { %v4350_v36 = vpop.eup %4349 }
 0xa93   :  { %768 = vrot.lane.b32.xlu0 %v4350_v36, %s4547_s11  ;;  %v4352_v39 = vpop.eup %4351 }
 0xa94   :  { %v860_v40 = vadd.f32 1.0, %v4352_v39  ;;  %v4354_v41 = vpop.eup %4353 }
 0xa95   :  { %v762_v42 = vadd.f32 1.0, %v4354_v41 }
 0xa96   :  { %4355 = vrcp.f32 %v860_v40 }
 0xa97   :  { %4357 = vrcp.f32 %v762_v42 }
 0xaa0   :  { %v4356_v43 = vpop.eup %4355 }
 0xaa1   :  { %v4358_v46 = vpop.eup %4357  ;;  %v864_v49 = vmul.f32 %v4356_v43, %v4777_v9 }
 0xaa2   :  { %v766_v52 = vmul.f32 %v4358_v46, %v4781_v13 }
 0xb02   :  { %v867_v44 = vpop.permute.xlu1 %866 }
 0xb03   :  { %v869_v45 = vmul.f32 %v4356_v43, %v867_v44 }
 0xb05   :  { %871 = vrot.lane.b32.xlu1 %v869_v45, %s4552_s28  ;;  %v769_v47 = vpop.permute.xlu0 %768 }
 0xb06   :  { %v771_v48 = vmul.f32 %v4358_v46, %v769_v47 }
 0xb08   :  { %773 = vrot.lane.b32.xlu0 %v771_v48, %s4552_s28 }
 0xb77   :  { %v872_v50 = vpop.permute.xlu1 %871 }
 0xb78   :  { %v4816_v51 = vadd.f32 %v872_v50, %v864_v49 }
 0xb7a   :  { %4359 = vtanh.f32 %v4816_v51  ;;  %v774_v53 = vpop.permute.xlu0 %773 }
 0xb7b   :  { %v4820_v54 = vadd.f32 %v774_v53, %v766_v52 }
 0xb7d   :  { %4361 = vtanh.f32 %v4820_v54 }
 0xb84   :  { %v4360_v55 = vpop.eup %4359 }
 0xb85   :  { %877 = vrot.lane.b32.xlu1 %v4360_v55, %s4547_s11 }
 0xb87   :  { %v4362_v57 = vpop.eup %4361 }
 0xb88   :  { %779 = vrot.lane.b32.xlu0 %v4362_v57, %s4547_s11 }
 0xbf7   :  { %v878_v59 = vpop.permute.xlu1 %877 }
 0xbf8   :  { %v880_v60 = vmul.f32 %v4356_v43, %v878_v59 }
 0xbfa   :  { %882 = vrot.lane.b32.xlu0 %v880_v60, %s4552_s28  ;;  %v780_v61 = vpop.permute.xlu0 %779 }
 0xbfb   :  { %v782_v62 = vmul.f32 %v4358_v46, %v780_v61 }
 0xbfd   :  { %886 = vrot.lane.b32.xlu1 %v782_v62, %s4547_s11 }
 0xc6c   :  { %v883_v63 = vpop.permute.xlu0 %882 }
 0xc6d   :  { %3701 = vmatmul.mubr.msk.f32.vlgmr.msra.gmra.mrb[8].mxu0 %vm73_vm1, %v883_v63 }
 0xc6e   :  { %4100 = vmatpush3.bf16.msra.mxu0 %v4619_v12  ;;  %3719 = vmatprep.mubr.msk.f32.mxu0 %vm4549_vm0, %v4550_v16 }
 0xc6f   :  { %4101 = vmatprep.subr.bf16.mxu0 %v4548_v8  ;;  %v887_v0 = vpop.permute.xlu1 %886 }
 0xc70   :  { %v889_v1 = vsel %vm73_vm1, %v883_v63, %v887_v0 }
 0xc71   :  { %3690 = vmatmul.mubr.msk.f32.vlgmr.msra.gmra.mrb[8].mxu1 %vm273_vm2, %v889_v1 }
 0xc72   :  { %4103 = vmatpush3.bf16.msra.mxu0 %v4643_v20  ;;  %4112 = vmatpush3.bf16.msra.mxu1 %v4634_v17 }
 0xc73   :  { %4104 = vmatprep.subr.bf16.mxu0 %v4548_v8  ;;  %4113 = vmatprep.subr.bf16.mxu1 %v4548_v8 }
 0xc74   :  { %3730 = vmatprep.mubr.msk.f32.mxu1 %vm4549_vm0, %v4550_v16 }
 0xc76   :  { %4106 = vmatpush3.bf16.msra.mxu0 %v4696_v56  ;;  %4115 = vmatpush3.bf16.msra.mxu1 %v4647_v21 }
 0xc77   :  { %4107 = vmatprep.subr.bf16.mxu0 %v4548_v8  ;;  %4116 = vmatprep.subr.bf16.mxu1 %v4548_v8 }
 0xc7a   :  { %4109 = vmatpush3.bf16.msra.mxu0 %v4702_v58 }
 0xc7b   :  { %4128 = vmatprep.subr.bf16.mxu0 %v4548_v8 }
 0xd40   :  { %v1056_v3 = vpop.f32.mrb[8].mxu0 }
 0xd41   :  { %v1060_v4 = vadd.f32 %v1056_v3, %v987_v2  ;;  %v3702_v5 = vpop.f32.mrb[9].mxu0 }
 0xd43   :  { %4363 = vtanh.f32 %v1060_v4  ;;  %v3306_v13 = vmul.f32 -1.442695, %v1060_v4 }
 0xd44   :  { %v959_v6 = vpop.f32.mrb[8].mxu1 }
 0xd45   :  { %v960_v7 = vadd.f32 %v4677_v29, %v959_v6  ;;  %v3691_v9 = vpop.f32.mrb[9].mxu1 }
 0xd47   :  { %4365 = vtanh.f32 %v960_v7  ;;  %v3304_v14 = vmul.f32 -1.442695, %v960_v7 }
 0xd48   :  { %4367 = vpow2.f32 %v3306_v13 }
 0xd49   :  { %4369 = vpow2.f32 %v3304_v14 }
 0xd4d   :  { %v4364_v10 = vpop.eup %4363 }
 0xd4e   :  { %1070 = vrot.lane.b32.xlu1 %v4364_v10, %s4547_s11 }
 0xd51   :  { %v4366_v11 = vpop.eup %4365 }
 0xd52   :  { %972 = vrot.lane.b32.xlu0 %v4366_v11, %s4547_s11  ;;  %v4368_v15 = vpop.eup %4367 }
 0xd53   :  { %v1064_v18 = vadd.f32 1.0, %v4368_v15  ;;  %v4370_v19 = vpop.eup %4369 }
 0xd54   :  { %v966_v22 = vadd.f32 1.0, %v4370_v19 }
 0xd55   :  { %4371 = vrcp.f32 %v1064_v18 }
 0xd56   :  { %4373 = vrcp.f32 %v966_v22 }
 0xd5f   :  { %v4372_v23 = vpop.eup %4371 }
 0xd60   :  { %v4374_v26 = vpop.eup %4373  ;;  %v1068_v30 = vmul.f32 %v4372_v23, %v4816_v51 }
 0xd61   :  { %v970_v33 = vmul.f32 %v4374_v26, %v4820_v54 }
 0xdc0   :  { %v1071_v24 = vpop.permute.xlu1 %1070 }
 0xdc1   :  { %v1073_v25 = vmul.f32 %v4372_v23, %v1071_v24 }
 0xdc3   :  { %1075 = vrot.lane.b32.xlu1 %v1073_v25, %s4552_s28 }
 0xdc4   :  { %v973_v27 = vpop.permute.xlu0 %972 }
 0xdc5   :  { %v975_v28 = vmul.f32 %v4374_v26, %v973_v27 }
 0xdc7   :  { %977 = vrot.lane.b32.xlu0 %v975_v28, %s4552_s28 }
 0xe35   :  { %v1076_v31 = vpop.permute.xlu1 %1075 }
 0xe36   :  { %v4855_v32 = vadd.f32 %v1076_v31, %v1068_v30 }
 0xe38   :  { %4375 = vtanh.f32 %v4855_v32 }
 0xe39   :  { %v978_v34 = vpop.permute.xlu0 %977 }
 0xe3a   :  { %v4859_v35 = vadd.f32 %v978_v34, %v970_v33 }
 0xe3c   :  { %4377 = vtanh.f32 %v4859_v35 }
 0xe42   :  { %v4376_v36 = vpop.eup %4375 }
 0xe43   :  { %1081 = vrot.lane.b32.xlu1 %v4376_v36, %s4547_s11 }
 0xe46   :  { %v4378_v37 = vpop.eup %4377 }
 0xe47   :  { %983 = vrot.lane.b32.xlu0 %v4378_v37, %s4547_s11 }
 0xeb5   :  { %v1082_v38 = vpop.permute.xlu1 %1081 }
 0xeb6   :  { %v1084_v39 = vmul.f32 %v4372_v23, %v1082_v38 }
 0xeb8   :  { %1086 = vrot.lane.b32.xlu0 %v1084_v39, %s4552_s28 }
 0xeb9   :  { %v984_v40 = vpop.permute.xlu0 %983 }
 0xeba   :  { %v986_v41 = vmul.f32 %v4374_v26, %v984_v40 }
 0xebc   :  { %1090 = vrot.lane.b32.xlu1 %v986_v41, %s4547_s11 }
 0xf2a   :  { %v1087_v42 = vpop.permute.xlu0 %1086 }
 0xf2b   :  { %3731 = vmatmul.mubr.msk.f32.vlgmr.msra.gmra.mrb[10].mxu1 %vm73_vm1, %v1087_v42 }
 0xf2c   :  { %4118 = vmatpush3.bf16.msra.mxu1 %v4619_v12  ;;  %3749 = vmatprep.mubr.msk.f32.mxu1 %vm4549_vm0, %v4550_v16 }
 0xf2d   :  { %4119 = vmatprep.subr.bf16.mxu1 %v4548_v8 }
 0xf2e   :  { %v1091_v43 = vpop.permute.xlu1 %1090 }
 0xf2f   :  { %v1093_v44 = vsel %vm73_vm1, %v1087_v42, %v1091_v43 }
 0xf30   :  { %4121 = vmatpush3.bf16.msra.mxu1 %v4643_v20  ;;  %3720 = vmatmul.mubr.msk.f32.vlgmr.msra.gmra.mrb[10].mxu0 %vm273_vm2, %v1093_v44 }
 0xf31   :  { %4122 = vmatprep.subr.bf16.mxu1 %v4548_v8  ;;  %4130 = vmatpush3.bf16.msra.mxu0 %v4634_v17  ;;  %v1191_v17 = vld [vmem:[%s5299_s0 + $0xc] sm:$0x3] }
 0xf32   :  { %3760 = vmatprep.mubr.msk.f32.mxu0 %vm4549_vm0, %v4550_v16  ;;  %4131 = vmatprep.subr.bf16.mxu0 %v4548_v8 }
 0xf34   :  { %4124 = vmatpush3.bf16.msra.mxu1 %v4696_v56 }
 0xf35   :  { %4125 = vmatprep.subr.bf16.mxu1 %v4548_v8  ;;  %4133 = vmatpush3.bf16.msra.mxu0 %v4647_v21 }
 0xf36   :  { %4134 = vmatprep.subr.bf16.mxu0 %v4548_v8 }
 0xf38   :  { %4127 = vmatpush3.bf16.msra.mxu1 %v4702_v58 }
 0xf39   :  { %4146 = vmatprep.subr.bf16.mxu1 %v4548_v8 }
 0xffe   :  { %v1260_v45 = vpop.f32.mrb[10].mxu1 }
 0xfff   :  { %v1264_v46 = vadd.f32 %v1260_v45, %v1191_v17  ;;  %v3732_v47 = vpop.f32.mrb[11].mxu1 }
0x1001   :  { %4379 = vtanh.f32 %v1264_v46  ;;  %v3310_v52 = vmul.f32 -1.442695, %v1264_v46 }
0x1003   :  { %v1163_v48 = vpop.f32.mrb[10].mxu0 }
0x1004   :  { %v1164_v49 = vadd.f32 %v4677_v29, %v1163_v48  ;;  %v3721_v50 = vpop.f32.mrb[11].mxu0 }
0x1006   :  { %4381 = vtanh.f32 %v1164_v49  ;;  %v3308_v53 = vmul.f32 -1.442695, %v1164_v49 }
0x1007   :  { %4383 = vpow2.f32 %v3310_v52 }
0x1008   :  { %4385 = vpow2.f32 %v3308_v53 }
0x100b   :  { %v4380_v21 = vpop.eup %4379 }
0x100c   :  { %1274 = vrot.lane.b32.xlu1 %v4380_v21, %s4547_s11 }
0x1010   :  { %v4382_v51 = vpop.eup %4381 }
0x1011   :  { %1176 = vrot.lane.b32.xlu0 %v4382_v51, %s4547_s11  ;;  %v4384_v54 = vpop.eup %4383 }
0x1012   :  { %v1268_v55 = vadd.f32 1.0, %v4384_v54  ;;  %v4386_v57 = vpop.eup %4385 }
0x1013   :  { %v1170_v59 = vadd.f32 1.0, %v4386_v57 }
0x1014   :  { %4387 = vrcp.f32 %v1268_v55 }
0x1015   :  { %4389 = vrcp.f32 %v1170_v59 }
0x101e   :  { %v4388_v60 = vpop.eup %4387 }
0x101f   :  { %v4390_v63 = vpop.eup %4389  ;;  %v1272_v2 = vmul.f32 %v4388_v60, %v4855_v32 }
0x1020   :  { %v1174_v5 = vmul.f32 %v4390_v63, %v4859_v35 }
0x107e   :  { %v1275_v61 = vpop.permute.xlu1 %1274 }
0x107f   :  { %v1277_v62 = vmul.f32 %v4388_v60, %v1275_v61 }
0x1081   :  { %1279 = vrot.lane.b32.xlu1 %v1277_v62, %s4552_s28 }
0x1083   :  { %v1177_v0 = vpop.permute.xlu0 %1176 }
0x1084   :  { %v1179_v1 = vmul.f32 %v4390_v63, %v1177_v0 }
0x1086   :  { %1181 = vrot.lane.b32.xlu0 %v1179_v1, %s4552_s28 }
0x10f3   :  { %v1280_v3 = vpop.permute.xlu1 %1279 }
0x10f4   :  { %v1282_v4 = vadd.f32 %v1280_v3, %v1272_v2 }
0x10f6   :  { %4391 = vtanh.f32 %v1282_v4 }
0x10f8   :  { %v1182_v6 = vpop.permute.xlu0 %1181 }
0x10f9   :  { %v1184_v7 = vadd.f32 %v1182_v6, %v1174_v5  ;;  %v1600_v5 = vld [vmem:[%s5303_s4 + $0x8] sm:$0xff]  ;;  %v1601_v6 = vld [vmem:[%s5303_s4 + $0x10] sm:$0xff] }
0x10fb   :  { %4393 = vtanh.f32 %v1184_v7 }
0x1100   :  { %v4392_v9 = vpop.eup %4391 }
0x1101   :  { %1285 = vrot.lane.b32.xlu1 %v4392_v9, %s4547_s11  ;;  %v1602_v9 = vld [vmem:[%s5303_s4 + $0x18] sm:$0xff] }
0x1105   :  { %v4394_v10 = vpop.eup %4393 }
0x1106   :  { %1187 = vrot.lane.b32.xlu0 %v4394_v10, %s4547_s11  ;;  %v4150_v10 = vpack.c.bf16 %v1602_v9, %v1601_v6  ;;  %v1688_v6 = vld [vmem:[%s5305_s7 + $0x28] sm:$0xff] }
0x1173   :  { %v1286_v11 = vpop.permute.xlu1 %1285 }
0x1174   :  { %v1288_v13 = vmul.f32 %v4388_v60, %v1286_v11 }
0x1176   :  { %1290 = vrot.lane.b32.xlu0 %v1288_v13, %s4552_s28 }
0x1178   :  { %v1188_v14 = vpop.permute.xlu0 %1187 }
0x1179   :  { %v1190_v15 = vmul.f32 %v4390_v63, %v1188_v14 }
0x117b   :  { %1294 = vrot.lane.b32.xlu1 %v1190_v15, %s4547_s11 }
0x11e8   :  { %v1291_v18 = vpop.permute.xlu0 %1290 }
0x11e9   :  { %3761 = vmatmul.mubr.msk.f32.vlgmr.msra.gmra.mrb[12].mxu0 %vm73_vm1, %v1291_v18 }
0x11ea   :  { %4136 = vmatpush3.bf16.msra.mxu0 %v4619_v12  ;;  %3779 = vmatprep.mubr.msk.f32.mxu0 %vm4549_vm0, %v4550_v16  ;;  %v1395_v12 = vld [vmem:[%s5299_s0 + $0xe] sm:$0x3] }
0x11eb   :  { %4137 = vmatprep.subr.bf16.mxu0 %v4548_v8 }
0x11ed   :  { %v1295_v19 = vpop.permute.xlu1 %1294 }
0x11ee   :  { %4139 = vmatpush3.bf16.msra.mxu0 %v4643_v20  ;;  %v1297_v22 = vsel %vm73_vm1, %v1291_v18, %v1295_v19  ;;  %v1603_v18 = vld [vmem:[%s5304_s5] sm:$0x3] }
0x11ef   :  { %4140 = vmatprep.subr.bf16.mxu0 %v4548_v8  ;;  %3750 = vmatmul.mubr.msk.f32.vlgmr.msra.gmra.mrb[12].mxu1 %vm273_vm2, %v1297_v22 }
0x11f0   :  { %3790 = vmatprep.mubr.msk.f32.mxu1 %vm4549_vm0, %v4550_v16 }
0x11f2   :  { %4142 = vmatpush3.bf16.msra.mxu0 %v4696_v56 }
0x11f3   :  { %4143 = vmatprep.subr.bf16.mxu0 %v4548_v8 }
0x11f6   :  { %4145 = vmatpush3.bf16.msra.mxu0 %v4702_v58 }
0x11f7   :  { %4158 = vmatprep.subr.bf16.mxu0 %v4548_v8 }
0x12bc   :  { %v1464_v20 = vpop.f32.mrb[12].mxu0 }
0x12bd   :  { %v1468_v23 = vadd.f32 %v1464_v20, %v1395_v12  ;;  %v3762_v24 = vpop.f32.mrb[13].mxu0 }
0x12bf   :  { %4395 = vtanh.f32 %v1468_v23  ;;  %v3314_v58 = vmul.f32 -1.442695, %v1468_v23 }
0x12c2   :  { %v1367_v25 = vpop.f32.mrb[12].mxu1 }
0x12c3   :  { %v1368_v26 = vadd.f32 %v4677_v29, %v1367_v25  ;;  %v3751_v27 = vpop.f32.mrb[13].mxu1 }
0x12c5   :  { %4397 = vtanh.f32 %v1368_v26  ;;  %v3312_v30 = vmul.f32 -1.442695, %v1368_v26 }
0x12c6   :  { %4399 = vpow2.f32 %v3314_v58  ;;  %v1684_v58 = vld [vmem:[%s5305_s7 + $0x8] sm:$0xff] }
0x12c7   :  { %4401 = vpow2.f32 %v3312_v30  ;;  %v1679_v30 = vld [vmem:[%s5306_s6] sm:$0xff] }
0x12c9   :  { %v4396_v56 = vpop.eup %4395 }
0x12ca   :  { %1478 = vrot.lane.b32.xlu1 %v4396_v56, %s4547_s11 }
0x12cf   :  { %v4398_v28 = vpop.eup %4397 }
0x12d0   :  { %1380 = vrot.lane.b32.xlu0 %v4398_v28, %s4547_s11  ;;  %v4400_v31 = vpop.eup %4399  ;;  %v1683_v28 = vld [vmem:[%s5305_s7] sm:$0xff] }
0x12d1   :  { %v1472_v32 = vadd.f32 1.0, %v4400_v31  ;;  %v4402_v33 = vpop.eup %4401  ;;  %v4972_v31 = vpack.c.bf16 %v1684_v58, %v1683_v28 }
0x12d2   :  { %v1374_v34 = vadd.f32 1.0, %v4402_v33  ;;  %v1685_v33 = vld [vmem:[%s5305_s7 + $0x10] sm:$0xff] }
0x12d3   :  { %4403 = vrcp.f32 %v1472_v32  ;;  %v1680_v32 = vld [vmem:[%s5306_s6 + $0x8] sm:$0xff] }
0x12d4   :  { %4405 = vrcp.f32 %v1374_v34  ;;  %v1686_v34 = vld [vmem:[%s5305_s7 + $0x18] sm:$0xff] }
0x12dd   :  { %v4404_v35 = vpop.eup %4403 }
0x12de   :  { %v4406_v38 = vpop.eup %4405  ;;  %v1476_v41 = vmul.f32 %v4404_v35, %v1282_v4 }
0x12df   :  { %v1378_v44 = vmul.f32 %v4406_v38, %v1184_v7 }
0x133c   :  { %v1479_v36 = vpop.permute.xlu1 %1478 }
0x133d   :  { %v1481_v37 = vmul.f32 %v4404_v35, %v1479_v36  ;;  %v1681_v36 = vld [vmem:[%s5306_s6 + $0x10] sm:$0xff] }
0x133f   :  { %1483 = vrot.lane.b32.xlu1 %v1481_v37, %s4552_s28  ;;  %v1682_v37 = vld [vmem:[%s5306_s6 + $0x18] sm:$0xff] }
0x1342   :  { %v1381_v39 = vpop.permute.xlu0 %1380 }
0x1343   :  { %v1383_v40 = vmul.f32 %v4406_v38, %v1381_v39  ;;  %v4996_v39 = vpack.c.bf16 %v1682_v37, %v1681_v36 }
0x1345   :  { %1385 = vrot.lane.b32.xlu0 %v1383_v40, %s4552_s28 }
0x13b1   :  { %v1484_v42 = vpop.permute.xlu1 %1483 }
0x13b2   :  { %v1486_v43 = vadd.f32 %v1484_v42, %v1476_v41 }
0x13b4   :  { %4407 = vtanh.f32 %v1486_v43 }
0x13b7   :  { %v1386_v17 = vpop.permute.xlu0 %1385 }
0x13b8   :  { %v1388_v45 = vadd.f32 %v1386_v17, %v1378_v44 }
0x13ba   :  { %4409 = vtanh.f32 %v1388_v45 }
0x13be   :  { %v4408_v46 = vpop.eup %4407 }
0x13bf   :  { %1489 = vrot.lane.b32.xlu1 %v4408_v46, %s4547_s11 }
0x13c4   :  { %v4410_v47 = vpop.eup %4409 }
0x13c5   :  { %1391 = vrot.lane.b32.xlu0 %v4410_v47, %s4547_s11 }
0x1431   :  { %v1490_v48 = vpop.permute.xlu1 %1489 }
0x1432   :  { %v1492_v49 = vmul.f32 %v4404_v35, %v1490_v48  ;;  %v4983_v35 = vpack.c.bf16 %v1680_v32, %v1679_v30 }
0x1434   :  { %1494 = vrot.lane.b32.xlu0 %v1492_v49, %s4552_s28 }
0x1437   :  { %v1392_v50 = vpop.permute.xlu0 %1391 }
0x1438   :  { %v1394_v21 = vmul.f32 %v4406_v38, %v1392_v50  ;;  %v4992_v38 = vpack.c.bf16 %v1686_v34, %v1685_v33 }
0x143a   :  { %1498 = vrot.lane.b32.xlu1 %v1394_v21, %s4547_s11 }
0x14a6   :  { %v1495_v51 = vpop.permute.xlu0 %1494 }
0x14ac   :  { %v1499_v52 = vpop.permute.xlu1 %1498 }
0x14ad   :  { %v1501_v53 = vsel %vm73_vm1, %v1495_v51, %v1499_v52 }
0x14ae   :  { %3780 = vmatmul.mubr.msk.f32.vlgmr.msra.gmra.mrb[14].mxu0 %vm273_vm2, %v1501_v53 }
0x14af   :  { %3812 = vmatprep.mubr.msk.f32.mxu0 %vm4549_vm0, %v4550_v16  ;;  %4160 = vmatpush3.bf16.msra.mxu0 %v4983_v35 }
0x14b0   :  { %4161 = vmatprep.subr.bf16.mxu0 %v4548_v8 }
0x14b3   :  { %4163 = vmatpush3.bf16.msra.mxu0 %v4996_v39 }
0x14b4   :  { %4176 = vmatprep.subr.bf16.mxu0 %v4548_v8 }
0x1581   :  { %v1571_v54 = vpop.f32.mrb[14].mxu0 }
0x1582   :  { %v1572_v55 = vadd.f32 %v4677_v29, %v1571_v54  ;;  %v3781_v57 = vpop.f32.mrb[15].mxu0  ;;  %v1599_v29 = vld [vmem:[%s5303_s4] sm:$0xff] }
0x1583   :  { %v4147_v7 = vpack.c.bf16 %v1600_v5, %v1599_v29  ;;  %v1687_v5 = vld [vmem:[%s5305_s7 + $0x20] sm:$0xff] }
0x1584   :  { %4411 = vtanh.f32 %v1572_v55  ;;  %v3316_v60 = vmul.f32 -1.442695, %v1572_v55  ;;  %v5043_v9 = vpack.c.bf16 %v1688_v6, %v1687_v5 }
0x1585   :  { %4148 = vmatpush3.bf16.msra.mxu1 %v4147_v7  ;;  %v1689_v7 = vld [vmem:[%s5305_s7 + $0x30] sm:$0xff] }
0x1586   :  { %4413 = vpow2.f32 %v3316_v60  ;;  %4149 = vmatprep.subr.bf16.mxu1 %v4548_v8 }
0x1589   :  { %4151 = vmatpush3.bf16.msra.mxu1 %v4150_v10  ;;  %v1690_v10 = vld [vmem:[%s5305_s7 + $0x38] sm:$0xff] }
0x158a   :  { %4152 = vmatprep.subr.bf16.mxu1 %v4548_v8 }
0x158e   :  { %v4412_v59 = vpop.eup %4411 }
0x158f   :  { %1584 = vrot.lane.b32.xlu0 %v4412_v59, %s4547_s11 }
0x1590   :  { %v4414_v61 = vpop.eup %4413 }
0x1591   :  { %v1578_v62 = vadd.f32 1.0, %v4414_v61 }
0x1593   :  { %4415 = vrcp.f32 %v1578_v62 }
0x159d   :  { %v4416_v63 = vpop.eup %4415 }
0x159e   :  { %v1582_v2 = vmul.f32 %v4416_v63, %v1388_v45  ;;  %v5023_v45 = vld [vmem:[%s5307_s8] ss:$0 sm:$0xff] }
0x1601   :  { %v1585_v0 = vpop.permute.xlu0 %1584 }
0x1602   :  { %v1587_v1 = vmul.f32 %v4416_v63, %v1585_v0 }
0x1604   :  { %1589 = vrot.lane.b32.xlu1 %v1587_v1, %s4552_s28 }
0x1676   :  { %v1590_v3 = vpop.permute.xlu1 %1589 }
0x1677   :  { %v1592_v4 = vadd.f32 %v1590_v3, %v1582_v2 }
0x1679   :  { %4417 = vtanh.f32 %v1592_v4 }
0x1683   :  { %v4418_v11 = vpop.eup %4417 }
0x1684   :  { %1595 = vrot.lane.b32.xlu0 %v4418_v11, %s4547_s11  ;;  %v5049_v11 = vpack.c.bf16 %v1690_v10, %v1689_v7 }
0x16f6   :  { %v1596_v13 = vpop.permute.xlu0 %1595 }
0x16f7   :  { %v1598_v14 = vmul.f32 %v4416_v63, %v1596_v13 }
0x16f9   :  { %1605 = vrot.lane.b32.xlu1 %v1598_v14, %s4552_s28 }
0x176b   :  { %v4949_v15 = vpop.permute.xlu1 %1605 }
0x176c   :  { %3791 = vmatmul.mubr.msk.f32.vlgmr.msra.gmra.mrb[14].mxu1 %vm73_vm1, %v4949_v15 }
0x176d   :  { %3801 = vmatprep.mubr.msk.f32.mxu1 %vm4549_vm0, %v4550_v16  ;;  %4154 = vmatpush3.bf16.msra.mxu1 %v4972_v31 }
0x176e   :  { %4155 = vmatprep.subr.bf16.mxu1 %v4548_v8 }
0x1771   :  { %4157 = vmatpush3.bf16.msra.mxu1 %v4992_v38 }
0x1772   :  { %4164 = vmatprep.subr.bf16.mxu1 %v4548_v8 }
0x183f   :  { %v1675_v19 = vpop.f32.mrb[14].mxu1 }
0x1840   :  { %v4958_v22 = vadd.f32 %v1675_v19, %v1603_v18  ;;  %v3792_v12 = vpop.f32.mrb[15].mxu1 }
0x1842   :  { %4419 = vtanh.f32 %v4958_v22  ;;  %v3318_v23 = vmul.f32 -1.442695, %v4958_v22 }
0x1844   :  { %4421 = vpow2.f32 %v3318_v23 }
0x184c   :  { %v4420_v20 = vpop.eup %4419 }
0x184d   :  { %1700 = vrot.lane.b32.xlu0 %v4420_v20, %s4547_s11 }
0x184e   :  { %v4422_v24 = vpop.eup %4421 }
0x184f   :  { %v1695_v25 = vadd.f32 1.0, %v4422_v24 }
0x1851   :  { %4423 = vrcp.f32 %v1695_v25 }
0x185b   :  { %v4424_v26 = vpop.eup %4423 }
0x18bf   :  { %v1701_v27 = vpop.permute.xlu0 %1700 }
0x18c0   :  { %v1703_v56 = vmul.f32 %v4424_v26, %v1701_v27 }
0x18c2   :  { %4425 = vtanh.f32 %v1703_v56 }
0x18cc   :  { %v4426_v40 = vpop.eup %4425 }
0x18cd   :  { %1706 = vrot.lane.b32.xlu1 %v4426_v40, %s4551_s1 }
0x193f   :  { %v1707_v41 = vpop.permute.xlu1 %1706 }
0x1940   :  { %v1709_v42 = vmul.f32 %v4424_v26, %v1707_v41 }
0x1942   :  { %1717 = vrot.lane.b32.xlu0 %v1709_v42, %s4552_s28 }
0x1946   :  { %1888 = vrot.lane.b32.xlu0 %v1703_v56, %s4552_s28 }
0x19b4   :  { %v1718_v43 = vpop.permute.xlu0 %1717 }
0x19b5   :  { %3802 = vmatmul.mubr.msk.f32.vlgmr.msra.gmra.mrb[16].mxu1 %vm73_vm1, %v1718_v43  ;;  %3813 = vmatmul.mubr.msk.f32.vlgmr.msra.gmra.mrb[16].mxu0 %vm73_vm1, %v1718_v43 }
0x19b6   :  { %4166 = vmatpush3.bf16.msra.mxu1 %v4972_v31  ;;  %4178 = vmatpush3.bf16.msra.mxu0 %v4983_v35 }
0x19b7   :  { %4167 = vmatprep.subr.bf16.mxu1 %v4548_v8  ;;  %4179 = vmatprep.subr.bf16.mxu0 %v4548_v8 }
0x19b8   :  { %3842 = vmatprep.mubr.msk.f32.mxu0 %vm4549_vm0, %v4550_v16  ;;  %3831 = vmatprep.mubr.msk.f32.mxu1 %vm4549_vm0, %v4550_v16  ;;  %v1889_v2 = vpop.permute.xlu0 %1888 }
0x19ba   :  { %4169 = vmatpush3.bf16.msra.mxu1 %v4992_v38  ;;  %4181 = vmatpush3.bf16.msra.mxu0 %v4996_v39 }
0x19bb   :  { %4170 = vmatprep.subr.bf16.mxu1 %v4548_v8  ;;  %4182 = vmatprep.subr.bf16.mxu0 %v4548_v8 }
0x19be   :  { %4172 = vmatpush3.bf16.msra.mxu1 %v5043_v9 }
0x19bf   :  { %4173 = vmatprep.subr.bf16.mxu1 %v4548_v8 }
0x19c2   :  { %4175 = vmatpush3.bf16.msra.mxu1 %v5049_v11 }
0x19c3   :  { %4194 = vmatprep.subr.bf16.mxu1 %v4548_v8 }
0x1a88   :  { %v1787_v44 = vpop.f32.mrb[16].mxu1  ;;  %v1875_v17 = vpop.f32.mrb[16].mxu0 }
0x1a89   :  { %v1879_v46 = vadd.f32 %v1875_v17, %v4958_v22  ;;  %v3803_v47 = vpop.f32.mrb[17].mxu1  ;;  %v3814_v48 = vpop.f32.mrb[17].mxu0  ;;  %v1788_v49 = vadd.f32 %v5023_v45, %v1787_v44 }
0x1a8b   :  { %4427 = vtanh.f32 %v1879_v46  ;;  %v3323_v51 = vmul.f32 -1.442695, %v1879_v46  ;;  %v3321_v52 = vmul.f32 -1.442695, %v1788_v49 }
0x1a8c   :  { %4429 = vtanh.f32 %v1788_v49 }
0x1a8d   :  { %4431 = vpow2.f32 %v3323_v51 }
0x1a8e   :  { %4433 = vpow2.f32 %v3321_v52 }
0x1a95   :  { %v4428_v50 = vpop.eup %4427 }
0x1a96   :  { %1893 = vrot.lane.b32.xlu1 %v4428_v50, %s4547_s11  ;;  %v4430_v21 = vpop.eup %4429 }
0x1a97   :  { %v4432_v53 = vpop.eup %4431 }
0x1a98   :  { %v1883_v54 = vadd.f32 1.0, %v4432_v53  ;;  %v4434_v55 = vpop.eup %4433 }
0x1a99   :  { %v1794_v57 = vadd.f32 1.0, %v4434_v55 }
0x1a9a   :  { %1799 = vrot.lane.b32.xlu1 %v4430_v21, %s4547_s11  ;;  %4435 = vrcp.f32 %v1883_v54 }
0x1a9b   :  { %4437 = vrcp.f32 %v1794_v57 }
0x1aa4   :  { %v4436_v59 = vpop.eup %4435 }
0x1aa5   :  { %v4438_v62 = vpop.eup %4437  ;;  %v1891_v3 = vmul.f32 %v4436_v59, %v1889_v2 }
0x1b08   :  { %v1894_v60 = vpop.permute.xlu1 %1893 }
0x1b09   :  { %v1896_v61 = vmul.f32 %v4436_v59, %v1894_v60 }
0x1b0b   :  { %1898 = vrot.lane.b32.xlu0 %v1896_v61, %s4552_s28 }
0x1b0c   :  { %v1800_v63 = vpop.permute.xlu1 %1799 }
0x1b0d   :  { %v1802_v0 = vmul.f32 %v4438_v62, %v1800_v63 }
0x1b0f   :  { %4439 = vtanh.f32 %v1802_v0 }
0x1b19   :  { %v4440_v1 = vpop.eup %4439 }
0x1b1a   :  { %1805 = vrot.lane.b32.xlu1 %v4440_v1, %s4551_s1 }
0x1b7d   :  { %v1899_v4 = vpop.permute.xlu0 %1898 }
0x1b7e   :  { %v5031_v29 = vadd.f32 %v1899_v4, %v1891_v3 }
0x1b80   :  { %4441 = vtanh.f32 %v5031_v29 }
0x1b8a   :  { %v4442_v13 = vpop.eup %4441 }
0x1b8b   :  { %1904 = vrot.lane.b32.xlu0 %v4442_v13, %s4547_s11 }
0x1b8c   :  { %v1806_v14 = vpop.permute.xlu1 %1805 }
0x1b8d   :  { %v1808_v18 = vmul.f32 %v4438_v62, %v1806_v14 }
0x1b8f   :  { %1913 = vrot.lane.b32.xlu0 %v1808_v18, %s4547_s11 }
0x1bfd   :  { %v1905_v19 = vpop.permute.xlu0 %1904 }
0x1bfe   :  { %v1907_v12 = vmul.f32 %v4436_v59, %v1905_v19 }
0x1c00   :  { %1909 = vrot.lane.b32.xlu1 %v1907_v12, %s4552_s28 }
0x1c01   :  { %v5057_v20 = vpop.permute.xlu0 %1913 }
0x1c72   :  { %v1910_v23 = vpop.permute.xlu1 %1909 }
0x1c73   :  { %v1916_v24 = vsel %vm73_vm1, %v1910_v23, %v5057_v20  ;;  %3843 = vmatmul.mubr.msk.f32.vlgmr.msra.gmra.mrb[18].mxu0 %vm73_vm1, %v1910_v23 }
0x1c74   :  { %3832 = vmatmul.mubr.msk.f32.vlgmr.msra.gmra.mrb[18].mxu1 %vm273_vm2, %v1916_v24  ;;  %4184 = vmatpush3.bf16.msra.mxu0 %v4972_v31 }
0x1c75   :  { %4185 = vmatprep.subr.bf16.mxu0 %v4548_v8  ;;  %4196 = vmatpush3.bf16.msra.mxu1 %v4983_v35 }
0x1c76   :  { %4197 = vmatprep.subr.bf16.mxu1 %v4548_v8  ;;  %3872 = vmatprep.mubr.msk.f32.mxu1 %vm4549_vm0, %v4550_v16 }
0x1c77   :  { %3861 = vmatprep.mubr.msk.f32.mxu0 %vm4549_vm0, %v4550_v16 }
0x1c78   :  { %4187 = vmatpush3.bf16.msra.mxu0 %v4992_v38 }
0x1c79   :  { %4188 = vmatprep.subr.bf16.mxu0 %v4548_v8  ;;  %4199 = vmatpush3.bf16.msra.mxu1 %v4996_v39 }
0x1c7a   :  { %4200 = vmatprep.subr.bf16.mxu1 %v4548_v8 }
0x1c7c   :  { %4190 = vmatpush3.bf16.msra.mxu0 %v5043_v9 }
0x1c7d   :  { %4191 = vmatprep.subr.bf16.mxu0 %v4548_v8 }
0x1c80   :  { %4193 = vmatpush3.bf16.msra.mxu0 %v5049_v11 }
0x1c81   :  { %4212 = vmatprep.subr.bf16.mxu0 %v4548_v8 }
0x1d46   :  { %v2086_v25 = vpop.f32.mrb[18].mxu0 }
0x1d47   :  { %v2090_v26 = vadd.f32 %v2086_v25, %v4958_v22  ;;  %v1986_v27 = vpop.f32.mrb[18].mxu1  ;;  %v3844_v56 = vpop.f32.mrb[19].mxu0 }
0x1d48   :  { %v1987_v28 = vadd.f32 %v5023_v45, %v1986_v27  ;;  %v3833_v58 = vpop.f32.mrb[19].mxu1 }
0x1d49   :  { %4443 = vtanh.f32 %v2090_v26  ;;  %v3327_v33 = vmul.f32 -1.442695, %v2090_v26 }
0x1d4a   :  { %4445 = vtanh.f32 %v1987_v28  ;;  %v3325_v34 = vmul.f32 -1.442695, %v1987_v28 }
0x1d4b   :  { %4447 = vpow2.f32 %v3327_v33 }
0x1d4c   :  { %4449 = vpow2.f32 %v3325_v34 }
0x1d53   :  { %v4444_v30 = vpop.eup %4443 }
0x1d54   :  { %v4446_v32 = vpop.eup %4445  ;;  %2100 = vrot.lane.b32.xlu0 %v4444_v30, %s4547_s11 }
0x1d55   :  { %2003 = vrot.lane.b32.xlu1 %v4446_v32, %s4547_s11  ;;  %v4448_v36 = vpop.eup %4447 }
0x1d56   :  { %v4450_v37 = vpop.eup %4449  ;;  %v2094_v40 = vadd.f32 1.0, %v4448_v36 }
0x1d57   :  { %v1993_v41 = vadd.f32 1.0, %v4450_v37 }
0x1d58   :  { %4451 = vrcp.f32 %v2094_v40 }
0x1d59   :  { %1998 = vrot.lane.b32.xlu1 %v1802_v0, %s4552_s28  ;;  %4453 = vrcp.f32 %v1993_v41 }
0x1d62   :  { %v4452_v42 = vpop.eup %4451 }
0x1d63   :  { %v4454_v44 = vpop.eup %4453  ;;  %v2098_v49 = vmul.f32 %v4452_v42, %v5031_v29 }
0x1dc6   :  { %v2101_v43 = vpop.permute.xlu0 %2100 }
0x1dc7   :  { %v2103_v17 = vmul.f32 %v4452_v42, %v2101_v43  ;;  %v2004_v46 = vpop.permute.xlu1 %2003 }
0x1dc8   :  { %v2006_v47 = vmul.f32 %v4454_v44, %v2004_v46 }
0x1dc9   :  { %2105 = vrot.lane.b32.xlu1 %v2103_v17, %s4552_s28 }
0x1dca   :  { %2008 = vrot.lane.b32.xlu0 %v2006_v47, %s4552_s28 }
0x1dcb   :  { %v1999_v48 = vpop.permute.xlu1 %1998 }
0x1dcc   :  { %v2001_v50 = vmul.f32 %v4454_v44, %v1999_v48 }
0x1e3b   :  { %v2106_v21 = vpop.permute.xlu1 %2105 }
0x1e3c   :  { %v5087_v51 = vadd.f32 %v2106_v21, %v2098_v49  ;;  %v2009_v52 = vpop.permute.xlu0 %2008 }
0x1e3d   :  { %v5089_v53 = vadd.f32 %v2009_v52, %v2001_v50 }
0x1e3e   :  { %4455 = vtanh.f32 %v5087_v51 }
0x1e3f   :  { %4457 = vtanh.f32 %v5089_v53 }
0x1e48   :  { %v4456_v54 = vpop.eup %4455 }
0x1e49   :  { %v4458_v55 = vpop.eup %4457  ;;  %2111 = vrot.lane.b32.xlu1 %v4456_v54, %s4547_s11 }
0x1e4a   :  { %2014 = vrot.lane.b32.xlu0 %v4458_v55, %s4547_s11 }
0x1ebb   :  { %v2112_v57 = vpop.permute.xlu1 %2111 }
0x1ebc   :  { %v2114_v59 = vmul.f32 %v4452_v42, %v2112_v57  ;;  %v2015_v60 = vpop.permute.xlu0 %2014 }
0x1ebd   :  { %v5095_v61 = vmul.f32 %v4454_v44, %v2015_v60 }
0x1ebe   :  { %2116 = vrot.lane.b32.xlu0 %v2114_v59, %s4552_s28 }
0x1ebf   :  { %2120 = vrot.lane.b32.xlu1 %v5095_v61, %s4547_s11 }
0x1f30   :  { %v2117_v62 = vpop.permute.xlu0 %2116 }
0x1f31   :  { %v2121_v63 = vpop.permute.xlu1 %2120  ;;  %3873 = vmatmul.mubr.msk.f32.vlgmr.msra.gmra.mrb[20].mxu1 %vm73_vm1, %v2117_v62 }
0x1f32   :  { %v2123_v0 = vsel %vm73_vm1, %v2117_v62, %v2121_v63  ;;  %4202 = vmatpush3.bf16.msra.mxu1 %v4972_v31  ;;  %3891 = vmatprep.mubr.msk.f32.mxu1 %vm4549_vm0, %v4550_v16 }
0x1f33   :  { %3862 = vmatmul.mubr.msk.f32.vlgmr.msra.gmra.mrb[20].mxu0 %vm273_vm2, %v2123_v0  ;;  %4203 = vmatprep.subr.bf16.mxu1 %v4548_v8 }
0x1f34   :  { %4214 = vmatpush3.bf16.msra.mxu0 %v4983_v35  ;;  %3902 = vmatprep.mubr.msk.f32.mxu0 %vm4549_vm0, %v4550_v16 }
0x1f35   :  { %4215 = vmatprep.subr.bf16.mxu0 %v4548_v8 }
0x1f36   :  { %4205 = vmatpush3.bf16.msra.mxu1 %v4992_v38 }
0x1f37   :  { %4206 = vmatprep.subr.bf16.mxu1 %v4548_v8 }
0x1f38   :  { %4217 = vmatpush3.bf16.msra.mxu0 %v4996_v39 }
0x1f39   :  { %4218 = vmatprep.subr.bf16.mxu0 %v4548_v8 }
0x1f3a   :  { %4208 = vmatpush3.bf16.msra.mxu1 %v5043_v9 }
0x1f3b   :  { %4209 = vmatprep.subr.bf16.mxu1 %v4548_v8 }
0x1f3e   :  { %4211 = vmatpush3.bf16.msra.mxu1 %v5049_v11 }
0x1f3f   :  { %4230 = vmatprep.subr.bf16.mxu1 %v4548_v8 }
0x2004   :  { %v2289_v1 = vpop.f32.mrb[20].mxu1 }
0x2005   :  { %v2293_v2 = vadd.f32 %v2289_v1, %v4958_v22  ;;  %v3874_v3 = vpop.f32.mrb[21].mxu1 }
0x2006   :  { %v2193_v4 = vpop.f32.mrb[20].mxu0 }
0x2007   :  { %4459 = vtanh.f32 %v2293_v2  ;;  %v2194_v29 = vadd.f32 %v5023_v45, %v2193_v4  ;;  %v3863_v5 = vpop.f32.mrb[21].mxu0  ;;  %v3331_v10 = vmul.f32 -1.442695, %v2293_v2 }
0x2009   :  { %4461 = vtanh.f32 %v2194_v29  ;;  %v3329_v13 = vmul.f32 -1.442695, %v2194_v29 }
0x200a   :  { %4463 = vpow2.f32 %v3331_v10 }
0x200b   :  { %4465 = vpow2.f32 %v3329_v13 }
0x2011   :  { %v4460_v6 = vpop.eup %4459 }
0x2012   :  { %2303 = vrot.lane.b32.xlu1 %v4460_v6, %s4547_s11 }
0x2013   :  { %v4462_v7 = vpop.eup %4461 }
0x2014   :  { %2206 = vrot.lane.b32.xlu0 %v4462_v7, %s4547_s11  ;;  %v4464_v14 = vpop.eup %4463 }
0x2015   :  { %v4466_v18 = vpop.eup %4465  ;;  %v2297_v19 = vadd.f32 1.0, %v4464_v14 }
0x2016   :  { %v2200_v12 = vadd.f32 1.0, %v4466_v18 }
0x2017   :  { %4467 = vrcp.f32 %v2297_v19 }
0x2018   :  { %4469 = vrcp.f32 %v2200_v12 }
0x2021   :  { %v4468_v23 = vpop.eup %4467 }
0x2022   :  { %v4470_v26 = vpop.eup %4469  ;;  %v2301_v28 = vmul.f32 %v4468_v23, %v5087_v51 }
0x2023   :  { %v2204_v32 = vmul.f32 %v4470_v26, %v5089_v53 }
0x2084   :  { %v2304_v24 = vpop.permute.xlu1 %2303 }
0x2085   :  { %v2306_v25 = vmul.f32 %v4468_v23, %v2304_v24 }
0x2086   :  { %v2207_v27 = vpop.permute.xlu0 %2206 }
0x2087   :  { %2308 = vrot.lane.b32.xlu1 %v2306_v25, %s4552_s28  ;;  %v2209_v56 = vmul.f32 %v4470_v26, %v2207_v27 }
0x2089   :  { %2211 = vrot.lane.b32.xlu0 %v2209_v56, %s4552_s28 }
0x20f9   :  { %v2309_v58 = vpop.permute.xlu1 %2308 }
0x20fa   :  { %v5126_v30 = vadd.f32 %v2309_v58, %v2301_v28 }
0x20fb   :  { %v2212_v33 = vpop.permute.xlu0 %2211 }
0x20fc   :  { %4471 = vtanh.f32 %v5126_v30  ;;  %v5130_v34 = vadd.f32 %v2212_v33, %v2204_v32 }
0x20fe   :  { %4473 = vtanh.f32 %v5130_v34 }
0x2106   :  { %v4472_v36 = vpop.eup %4471 }
0x2107   :  { %2314 = vrot.lane.b32.xlu1 %v4472_v36, %s4547_s11 }
0x2108   :  { %v4474_v37 = vpop.eup %4473 }
0x2109   :  { %2217 = vrot.lane.b32.xlu0 %v4474_v37, %s4547_s11 }
0x2179   :  { %v2315_v40 = vpop.permute.xlu1 %2314 }
0x217a   :  { %v2317_v41 = vmul.f32 %v4468_v23, %v2315_v40 }
0x217b   :  { %v2218_v42 = vpop.permute.xlu0 %2217 }
0x217c   :  { %2319 = vrot.lane.b32.xlu0 %v2317_v41, %s4552_s28  ;;  %v5136_v43 = vmul.f32 %v4470_v26, %v2218_v42 }
0x217e   :  { %2323 = vrot.lane.b32.xlu1 %v5136_v43, %s4547_s11 }
0x21ee   :  { %v2320_v44 = vpop.permute.xlu0 %2319 }
0x21ef   :  { %3903 = vmatmul.mubr.msk.f32.vlgmr.msra.gmra.mrb[22].mxu0 %vm73_vm1, %v2320_v44 }
0x21f0   :  { %4220 = vmatpush3.bf16.msra.mxu0 %v4972_v31  ;;  %3921 = vmatprep.mubr.msk.f32.mxu0 %vm4549_vm0, %v4550_v16  ;;  %v2324_v17 = vpop.permute.xlu1 %2323 }
0x21f1   :  { %4221 = vmatprep.subr.bf16.mxu0 %v4548_v8  ;;  %v2326_v46 = vsel %vm73_vm1, %v2320_v44, %v2324_v17 }
0x21f2   :  { %3892 = vmatmul.mubr.msk.f32.vlgmr.msra.gmra.mrb[22].mxu1 %vm273_vm2, %v2326_v46 }
0x21f3   :  { %4232 = vmatpush3.bf16.msra.mxu1 %v4983_v35  ;;  %3932 = vmatprep.mubr.msk.f32.mxu1 %vm4549_vm0, %v4550_v16 }
0x21f4   :  { %4223 = vmatpush3.bf16.msra.mxu0 %v4992_v38  ;;  %4233 = vmatprep.subr.bf16.mxu1 %v4548_v8 }
0x21f5   :  { %4224 = vmatprep.subr.bf16.mxu0 %v4548_v8 }
0x21f7   :  { %4235 = vmatpush3.bf16.msra.mxu1 %v4996_v39 }
0x21f8   :  { %4226 = vmatpush3.bf16.msra.mxu0 %v5043_v9  ;;  %4236 = vmatprep.subr.bf16.mxu1 %v4548_v8 }
0x21f9   :  { %4227 = vmatprep.subr.bf16.mxu0 %v4548_v8 }
0x21fc   :  { %4229 = vmatpush3.bf16.msra.mxu0 %v5049_v11 }
0x21fd   :  { %4248 = vmatprep.subr.bf16.mxu0 %v4548_v8 }
0x22c2   :  { %v2492_v47 = vpop.f32.mrb[22].mxu0 }
0x22c3   :  { %v2496_v48 = vadd.f32 %v2492_v47, %v4958_v22  ;;  %v3904_v49 = vpop.f32.mrb[23].mxu0 }
0x22c5   :  { %4475 = vtanh.f32 %v2496_v48  ;;  %v2396_v50 = vpop.f32.mrb[22].mxu1  ;;  %v3335_v54 = vmul.f32 -1.442695, %v2496_v48 }
0x22c6   :  { %v2397_v21 = vadd.f32 %v5023_v45, %v2396_v50  ;;  %v3893_v51 = vpop.f32.mrb[23].mxu1 }
0x22c8   :  { %4477 = vtanh.f32 %v2397_v21  ;;  %v3333_v55 = vmul.f32 -1.442695, %v2397_v21 }
0x22c9   :  { %4479 = vpow2.f32 %v3335_v54 }
0x22ca   :  { %4481 = vpow2.f32 %v3333_v55 }
0x22cf   :  { %v4476_v52 = vpop.eup %4475 }
0x22d0   :  { %2506 = vrot.lane.b32.xlu1 %v4476_v52, %s4547_s11 }
0x22d2   :  { %v4478_v53 = vpop.eup %4477 }
0x22d3   :  { %2409 = vrot.lane.b32.xlu0 %v4478_v53, %s4547_s11  ;;  %v4480_v57 = vpop.eup %4479 }
0x22d4   :  { %v2500_v59 = vadd.f32 1.0, %v4480_v57  ;;  %v4482_v60 = vpop.eup %4481 }
0x22d5   :  { %v2403_v62 = vadd.f32 1.0, %v4482_v60 }
0x22d6   :  { %4483 = vrcp.f32 %v2500_v59 }
0x22d7   :  { %4485 = vrcp.f32 %v2403_v62 }
0x22e0   :  { %v4484_v63 = vpop.eup %4483 }
0x22e1   :  { %v4486_v2 = vpop.eup %4485  ;;  %v2504_v29 = vmul.f32 %v4484_v63, %v5126_v30 }
0x22e2   :  { %v2407_v7 = vmul.f32 %v4486_v2, %v5130_v34 }
0x2342   :  { %v2507_v0 = vpop.permute.xlu1 %2506 }
0x2343   :  { %v2509_v1 = vmul.f32 %v4484_v63, %v2507_v0 }
0x2345   :  { %2511 = vrot.lane.b32.xlu1 %v2509_v1, %s4552_s28  ;;  %v2410_v3 = vpop.permute.xlu0 %2409 }
0x2346   :  { %v2412_v4 = vmul.f32 %v4486_v2, %v2410_v3 }
0x2348   :  { %2414 = vrot.lane.b32.xlu0 %v2412_v4, %s4552_s28 }
0x23b7   :  { %v2512_v5 = vpop.permute.xlu1 %2511 }
0x23b8   :  { %v5166_v6 = vadd.f32 %v2512_v5, %v2504_v29 }
0x23ba   :  { %4487 = vtanh.f32 %v5166_v6  ;;  %v2415_v10 = vpop.permute.xlu0 %2414 }
0x23bb   :  { %v5170_v13 = vadd.f32 %v2415_v10, %v2407_v7 }
0x23bd   :  { %4489 = vtanh.f32 %v5170_v13 }
0x23c4   :  { %v4488_v14 = vpop.eup %4487 }
0x23c5   :  { %2517 = vrot.lane.b32.xlu1 %v4488_v14, %s4547_s11 }
0x23c7   :  { %v4490_v18 = vpop.eup %4489 }
0x23c8   :  { %2420 = vrot.lane.b32.xlu0 %v4490_v18, %s4547_s11 }
0x2437   :  { %v2518_v19 = vpop.permute.xlu1 %2517 }
0x2438   :  { %v2520_v12 = vmul.f32 %v4484_v63, %v2518_v19 }
0x243a   :  { %2522 = vrot.lane.b32.xlu0 %v2520_v12, %s4552_s28  ;;  %v2421_v23 = vpop.permute.xlu0 %2420 }
0x243b   :  { %v5176_v24 = vmul.f32 %v4486_v2, %v2421_v23 }
0x243d   :  { %2526 = vrot.lane.b32.xlu1 %v5176_v24, %s4547_s11 }
0x24ac   :  { %v2523_v25 = vpop.permute.xlu0 %2522 }
0x24ad   :  { %3933 = vmatmul.mubr.msk.f32.vlgmr.msra.gmra.mrb[24].mxu1 %vm73_vm1, %v2523_v25 }
0x24ae   :  { %4238 = vmatpush3.bf16.msra.mxu1 %v4972_v31  ;;  %3951 = vmatprep.mubr.msk.f32.mxu1 %vm4549_vm0, %v4550_v16 }
0x24af   :  { %4239 = vmatprep.subr.bf16.mxu1 %v4548_v8  ;;  %v2527_v26 = vpop.permute.xlu1 %2526 }
0x24b0   :  { %v2529_v27 = vsel %vm73_vm1, %v2523_v25, %v2527_v26 }
0x24b1   :  { %3922 = vmatmul.mubr.msk.f32.vlgmr.msra.gmra.mrb[24].mxu0 %vm273_vm2, %v2529_v27 }
0x24b2   :  { %4241 = vmatpush3.bf16.msra.mxu1 %v4992_v38  ;;  %4250 = vmatpush3.bf16.msra.mxu0 %v4983_v35 }
0x24b3   :  { %4242 = vmatprep.subr.bf16.mxu1 %v4548_v8  ;;  %4251 = vmatprep.subr.bf16.mxu0 %v4548_v8 }
0x24b4   :  { %3962 = vmatprep.mubr.msk.f32.mxu0 %vm4549_vm0, %v4550_v16 }
0x24b6   :  { %4244 = vmatpush3.bf16.msra.mxu1 %v5043_v9  ;;  %4253 = vmatpush3.bf16.msra.mxu0 %v4996_v39 }
0x24b7   :  { %4245 = vmatprep.subr.bf16.mxu1 %v4548_v8  ;;  %4254 = vmatprep.subr.bf16.mxu0 %v4548_v8 }
0x24ba   :  { %4247 = vmatpush3.bf16.msra.mxu1 %v5049_v11 }
0x24bb   :  { %4266 = vmatprep.subr.bf16.mxu1 %v4548_v8 }
0x2580   :  { %v2695_v56 = vpop.f32.mrb[24].mxu1 }
0x2581   :  { %v2699_v28 = vadd.f32 %v2695_v56, %v4958_v22  ;;  %v3934_v58 = vpop.f32.mrb[25].mxu1 }
0x2583   :  { %4491 = vtanh.f32 %v2699_v28  ;;  %v3339_v37 = vmul.f32 -1.442695, %v2699_v28 }
0x2584   :  { %v2599_v30 = vpop.f32.mrb[24].mxu0 }
0x2585   :  { %v2600_v32 = vadd.f32 %v5023_v45, %v2599_v30  ;;  %v3923_v33 = vpop.f32.mrb[25].mxu0 }
0x2587   :  { %4493 = vtanh.f32 %v2600_v32  ;;  %v3337_v40 = vmul.f32 -1.442695, %v2600_v32 }
0x2588   :  { %4495 = vpow2.f32 %v3339_v37 }
0x2589   :  { %4497 = vpow2.f32 %v3337_v40 }
0x258d   :  { %v4492_v34 = vpop.eup %4491 }
0x258e   :  { %2709 = vrot.lane.b32.xlu1 %v4492_v34, %s4547_s11 }
0x2591   :  { %v4494_v36 = vpop.eup %4493 }
0x2592   :  { %2612 = vrot.lane.b32.xlu0 %v4494_v36, %s4547_s11  ;;  %v4496_v41 = vpop.eup %4495 }
0x2593   :  { %v2703_v42 = vadd.f32 1.0, %v4496_v41  ;;  %v4498_v44 = vpop.eup %4497 }
0x2594   :  { %v2606_v17 = vadd.f32 1.0, %v4498_v44 }
0x2595   :  { %4499 = vrcp.f32 %v2703_v42 }
0x2596   :  { %4501 = vrcp.f32 %v2606_v17 }
0x259f   :  { %v4500_v46 = vpop.eup %4499 }
0x25a0   :  { %v4502_v49 = vpop.eup %4501  ;;  %v2707_v51 = vmul.f32 %v4500_v46, %v5166_v6 }
0x25a1   :  { %v2610_v54 = vmul.f32 %v4502_v49, %v5170_v13 }
0x2600   :  { %v2710_v47 = vpop.permute.xlu1 %2709 }
0x2601   :  { %v2712_v48 = vmul.f32 %v4500_v46, %v2710_v47 }
0x2603   :  { %2714 = vrot.lane.b32.xlu1 %v2712_v48, %s4552_s28 }
0x2604   :  { %v2613_v50 = vpop.permute.xlu0 %2612 }
0x2605   :  { %v2615_v21 = vmul.f32 %v4502_v49, %v2613_v50 }
0x2607   :  { %2617 = vrot.lane.b32.xlu0 %v2615_v21, %s4552_s28 }
0x2675   :  { %v2715_v52 = vpop.permute.xlu1 %2714 }
0x2676   :  { %v5206_v53 = vadd.f32 %v2715_v52, %v2707_v51 }
0x2678   :  { %4503 = vtanh.f32 %v5206_v53 }
0x2679   :  { %v2618_v55 = vpop.permute.xlu0 %2617 }
0x267a   :  { %v5210_v57 = vadd.f32 %v2618_v55, %v2610_v54 }
0x267c   :  { %4505 = vtanh.f32 %v5210_v57 }
0x2682   :  { %v4504_v59 = vpop.eup %4503 }
0x2683   :  { %2720 = vrot.lane.b32.xlu1 %v4504_v59, %s4547_s11 }
0x2686   :  { %v4506_v60 = vpop.eup %4505 }
0x2687   :  { %2623 = vrot.lane.b32.xlu0 %v4506_v60, %s4547_s11 }
0x26f5   :  { %v2721_v62 = vpop.permute.xlu1 %2720 }
0x26f6   :  { %v2723_v63 = vmul.f32 %v4500_v46, %v2721_v62 }
0x26f8   :  { %2725 = vrot.lane.b32.xlu0 %v2723_v63, %s4552_s28 }
0x26f9   :  { %v2624_v0 = vpop.permute.xlu0 %2623 }
0x26fa   :  { %v2626_v1 = vmul.f32 %v4502_v49, %v2624_v0 }
0x26fc   :  { %2729 = vrot.lane.b32.xlu1 %v2626_v1, %s4547_s11 }
0x276a   :  { %v2726_v2 = vpop.permute.xlu0 %2725 }
0x276b   :  { %3963 = vmatmul.mubr.msk.f32.vlgmr.msra.gmra.mrb[26].mxu0 %vm73_vm1, %v2726_v2 }
0x276c   :  { %4256 = vmatpush3.bf16.msra.mxu0 %v4972_v31  ;;  %3981 = vmatprep.mubr.msk.f32.mxu0 %vm4549_vm0, %v4550_v16 }
0x276d   :  { %4257 = vmatprep.subr.bf16.mxu0 %v4548_v8 }
0x276e   :  { %v5222_v3 = vpop.permute.xlu1 %2729 }
0x276f   :  { %v2732_v4 = vsel %vm73_vm1, %v2726_v2, %v5222_v3 }
0x2770   :  { %4259 = vmatpush3.bf16.msra.mxu0 %v4992_v38  ;;  %3952 = vmatmul.mubr.msk.f32.vlgmr.msra.gmra.mrb[26].mxu1 %vm273_vm2, %v2732_v4 }
0x2771   :  { %4260 = vmatprep.subr.bf16.mxu0 %v4548_v8  ;;  %4268 = vmatpush3.bf16.msra.mxu1 %v4983_v35 }
0x2772   :  { %3992 = vmatprep.mubr.msk.f32.mxu1 %vm4549_vm0, %v4550_v16  ;;  %4269 = vmatprep.subr.bf16.mxu1 %v4548_v8 }
0x2774   :  { %4262 = vmatpush3.bf16.msra.mxu0 %v5043_v9 }
0x2775   :  { %4263 = vmatprep.subr.bf16.mxu0 %v4548_v8  ;;  %4271 = vmatpush3.bf16.msra.mxu1 %v4996_v39 }
0x2776   :  { %4272 = vmatprep.subr.bf16.mxu1 %v4548_v8 }
0x2778   :  { %4265 = vmatpush3.bf16.msra.mxu0 %v5049_v11 }
0x283e   :  { %v2898_v29 = vpop.f32.mrb[26].mxu0 }
0x283f   :  { %v2902_v5 = vadd.f32 %v2898_v29, %v4958_v22  ;;  %v3964_v6 = vpop.f32.mrb[27].mxu0 }
0x2841   :  { %4507 = vtanh.f32 %v2902_v5  ;;  %v3343_v39 = vmul.f32 -1.442695, %v2902_v5 }
0x2843   :  { %v2802_v35 = vpop.f32.mrb[26].mxu1 }
0x2844   :  { %v2803_v7 = vadd.f32 %v5023_v45, %v2802_v35  ;;  %v3953_v10 = vpop.f32.mrb[27].mxu1 }
0x2846   :  { %4509 = vtanh.f32 %v2803_v7  ;;  %v3341_v18 = vmul.f32 -1.442695, %v2803_v7 }
0x2847   :  { %4511 = vpow2.f32 %v3343_v39 }
0x2848   :  { %4513 = vpow2.f32 %v3341_v18 }
0x284b   :  { %v4508_v13 = vpop.eup %4507 }
0x284c   :  { %2912 = vrot.lane.b32.xlu1 %v4508_v13, %s4547_s11 }
0x2850   :  { %v4510_v14 = vpop.eup %4509 }
0x2851   :  { %2815 = vrot.lane.b32.xlu0 %v4510_v14, %s4547_s11  ;;  %v4512_v19 = vpop.eup %4511 }
0x2852   :  { %v2906_v12 = vadd.f32 1.0, %v4512_v19  ;;  %v4514_v23 = vpop.eup %4513 }
0x2853   :  { %v2809_v25 = vadd.f32 1.0, %v4514_v23 }
0x2854   :  { %4515 = vrcp.f32 %v2906_v12 }
0x2855   :  { %4517 = vrcp.f32 %v2809_v25 }
0x285e   :  { %v4516_v26 = vpop.eup %4515 }
0x285f   :  { %v4518_v28 = vpop.eup %4517  ;;  %v2910_v32 = vmul.f32 %v4516_v26, %v5206_v53 }
0x2860   :  { %v2813_v36 = vmul.f32 %v4518_v28, %v5210_v57 }
0x28be   :  { %v2913_v27 = vpop.permute.xlu1 %2912 }
0x28bf   :  { %v2915_v56 = vmul.f32 %v4516_v26, %v2913_v27 }
0x28c1   :  { %2917 = vrot.lane.b32.xlu1 %v2915_v56, %s4552_s28 }
0x28c3   :  { %v2816_v58 = vpop.permute.xlu0 %2815 }
0x28c4   :  { %v2818_v30 = vmul.f32 %v4518_v28, %v2816_v58 }
0x28c6   :  { %2820 = vrot.lane.b32.xlu0 %v2818_v30, %s4552_s28 }
0x2933   :  { %v2918_v33 = vpop.permute.xlu1 %2917 }
0x2934   :  { %v2920_v34 = vadd.f32 %v2918_v33, %v2910_v32 }
0x2936   :  { %4519 = vtanh.f32 %v2920_v34 }
0x2938   :  { %v2821_v37 = vpop.permute.xlu0 %2820 }
0x2939   :  { %v2823_v40 = vadd.f32 %v2821_v37, %v2813_v36 }
0x293b   :  { %4521 = vtanh.f32 %v2823_v40 }
0x2940   :  { %v4520_v41 = vpop.eup %4519 }
0x2941   :  { %2923 = vrot.lane.b32.xlu1 %v4520_v41, %s4547_s11 }
0x2945   :  { %v4522_v42 = vpop.eup %4521 }
0x2946   :  { %2826 = vrot.lane.b32.xlu0 %v4522_v42, %s4547_s11 }
0x29b3   :  { %v2924_v44 = vpop.permute.xlu1 %2923 }
0x29b4   :  { %v2926_v17 = vmul.f32 %v4516_v26, %v2924_v44 }
0x29b6   :  { %2928 = vrot.lane.b32.xlu0 %v2926_v17, %s4552_s28 }
0x29b8   :  { %v2827_v46 = vpop.permute.xlu0 %2826 }
0x29b9   :  { %v5249_v47 = vmul.f32 %v4518_v28, %v2827_v46 }
0x29bb   :  { %2932 = vrot.lane.b32.xlu1 %v5249_v47, %s4547_s11 }
0x2a28   :  { %v2929_v48 = vpop.permute.xlu0 %2928 }
0x2a29   :  { %3993 = vmatmul.mubr.msk.f32.vlgmr.msra.gmra.mrb[28].mxu1 %vm73_vm1, %v2929_v48 }
0x2a2a   :  { %4274 = vmatpush3.bf16.msra.mxu1 %v4972_v31  ;;  %4011 = vmatprep.mubr.msk.f32.mxu1 %vm4549_vm0, %v4550_v16 }
0x2a2b   :  { %4275 = vmatprep.subr.bf16.mxu1 %v4548_v8 }
0x2a2d   :  { %v2933_v49 = vpop.permute.xlu1 %2932 }
0x2a2e   :  { %4277 = vmatpush3.bf16.msra.mxu1 %v4992_v38  ;;  %v2935_v50 = vsel %vm73_vm1, %v2929_v48, %v2933_v49  ;;  %v3262_v48 = vlaneseq }
0x2a2f   :  { %4278 = vmatprep.subr.bf16.mxu1 %v4548_v8  ;;  %3982 = vmatmul.mubr.msk.f32.vlgmr.msra.gmra.mrb[28].mxu0 %vm273_vm2, %v2935_v50 }
0x2a32   :  { %4280 = vmatpush3.bf16.msra.mxu1 %v5043_v9 }
0x2a33   :  { %4281 = vmatprep.subr.bf16.mxu1 %v4548_v8 }
0x2a36   :  { %4283 = vmatpush3.bf16.msra.mxu1 %v5049_v11 }
0x2afc   :  { %v3101_v31 = vpop.f32.mrb[28].mxu1 }
0x2afd   :  { %v3105_v16 = vadd.f32 %v3101_v31, %v4958_v22  ;;  %v3994_v21 = vpop.f32.mrb[29].mxu1 }
0x2afe   :  { %v3263_v21 = vshrl.u32 %v3262_v48, 7 }
0x2aff   :  { %4523 = vtanh.f32 %v3105_v16  ;;  %v3347_v9 = vmul.f32 -1.442695, %v3105_v16 }
0x2b02   :  { %v3005_v51 = vpop.f32.mrb[28].mxu0 }
0x2b03   :  { %v3006_v38 = vadd.f32 %v5023_v45, %v3005_v51  ;;  %v3983_v52 = vpop.f32.mrb[29].mxu0 }
0x2b05   :  { %4525 = vtanh.f32 %v3006_v38  ;;  %v3345_v8 = vmul.f32 -1.442695, %v3006_v38 }
0x2b06   :  { %4527 = vpow2.f32 %v3347_v9 }
0x2b07   :  { %4529 = vpow2.f32 %v3345_v8 }
0x2b09   :  { %v4524_v53 = vpop.eup %4523 }
0x2b0a   :  { %3115 = vrot.lane.b32.xlu1 %v4524_v53, %s4547_s11 }
0x2b0f   :  { %v4526_v54 = vpop.eup %4525 }
0x2b10   :  { %3018 = vrot.lane.b32.xlu0 %v4526_v54, %s4547_s11  ;;  %v4528_v11 = vpop.eup %4527 }
0x2b11   :  { %v3109_v55 = vadd.f32 1.0, %v4528_v11  ;;  %v4530_v22 = vpop.eup %4529 }
0x2b12   :  { %v3012_v57 = vadd.f32 1.0, %v4530_v22 }
0x2b13   :  { %4531 = vrcp.f32 %v3109_v55 }
0x2b14   :  { %4533 = vrcp.f32 %v3012_v57 }
0x2b1d   :  { %v4532_v59 = vpop.eup %4531 }
0x2b1e   :  { %v4534_v63 = vpop.eup %4533  ;;  %v3113_v2 = vmul.f32 %v4532_v59, %v2920_v34 }
0x2b1f   :  { %v3016_v5 = vmul.f32 %v4534_v63, %v2823_v40 }
0x2b7c   :  { %v3116_v60 = vpop.permute.xlu1 %3115 }
0x2b7d   :  { %v3118_v62 = vmul.f32 %v4532_v59, %v3116_v60 }
0x2b7f   :  { %3120 = vrot.lane.b32.xlu1 %v3118_v62, %s4552_s28 }
0x2b82   :  { %v3019_v0 = vpop.permute.xlu0 %3018 }
0x2b83   :  { %v3021_v1 = vmul.f32 %v4534_v63, %v3019_v0 }
0x2b85   :  { %3023 = vrot.lane.b32.xlu0 %v3021_v1, %s4552_s28 }
0x2bf1   :  { %v3121_v4 = vpop.permute.xlu1 %3120 }
0x2bf2   :  { %v3123_v29 = vadd.f32 %v3121_v4, %v3113_v2 }
0x2bf4   :  { %4535 = vtanh.f32 %v3123_v29 }
0x2bf7   :  { %v3024_v6 = vpop.permute.xlu0 %3023 }
0x2bf8   :  { %v3026_v35 = vadd.f32 %v3024_v6, %v3016_v5 }
0x2bfa   :  { %4537 = vtanh.f32 %v3026_v35 }
0x2bfe   :  { %v4536_v7 = vpop.eup %4535 }
0x2bff   :  { %3126 = vrot.lane.b32.xlu1 %v4536_v7, %s4547_s11 }
0x2c04   :  { %v4538_v10 = vpop.eup %4537 }
0x2c05   :  { %3029 = vrot.lane.b32.xlu0 %v4538_v10, %s4547_s11 }
0x2c71   :  { %v3127_v13 = vpop.permute.xlu1 %3126 }
0x2c72   :  { %v3129_v14 = vmul.f32 %v4532_v59, %v3127_v13 }
0x2c74   :  { %3131 = vrot.lane.b32.xlu0 %v3129_v14, %s4552_s28 }
0x2c77   :  { %v3030_v39 = vpop.permute.xlu0 %3029 }
0x2c78   :  { %v3032_v18 = vmul.f32 %v4534_v63, %v3030_v39 }
0x2c7a   :  { %3135 = vrot.lane.b32.xlu1 %v3032_v18, %s4547_s11 }
0x2ce6   :  { %v3132_v19 = vpop.permute.xlu0 %3131 }
0x2cec   :  { %v3136_v12 = vpop.permute.xlu1 %3135 }
0x2ced   :  { %v3138_v23 = vsel %vm73_vm1, %v3132_v19, %v3136_v12 }
0x2cee   :  { %4012 = vmatmul.mubr.msk.f32.vlgmr.msra.gmra.mrb[30].mxu1 %vm273_vm2, %v3138_v23 }
0x2dc1   :  { %v3208_v25 = vpop.f32.mrb[30].mxu1 }
0x2dc2   :  { %v3209_v26 = vadd.f32 %v5023_v45, %v3208_v25  ;;  %v4013_v27 = vpop.f32.mrb[31].mxu1 }
0x2dc4   :  { %4539 = vtanh.f32 %v3209_v26  ;;  %v3349_v28 = vmul.f32 -1.442695, %v3209_v26 }
0x2dc6   :  { %4541 = vpow2.f32 %v3349_v28 }
0x2dce   :  { %v4540_v56 = vpop.eup %4539 }
0x2dcf   :  { %3221 = vrot.lane.b32.xlu0 %v4540_v56, %s4547_s11 }
0x2dd0   :  { %v4542_v58 = vpop.eup %4541 }
0x2dd1   :  { %v3215_v30 = vadd.f32 1.0, %v4542_v58 }
0x2dd3   :  { %4543 = vrcp.f32 %v3215_v30 }
0x2ddd   :  { %v4544_v32 = vpop.eup %4543 }
0x2dde   :  { %v3219_v45 = vmul.f32 %v4544_v32, %v3026_v35 }
0x2e41   :  { %v3222_v33 = vpop.permute.xlu0 %3221 }
0x2e42   :  { %v3224_v34 = vmul.f32 %v4544_v32, %v3222_v33 }
0x2e44   :  { %3226 = vrot.lane.b32.xlu1 %v3224_v34, %s4552_s28 }
0x2e48   :  { %3240 = vrot.lane.b32.xlu1 %v5176_v24, %s4552_s28  ;;  %v4553_v24 = vmov 1983009808  }
0x2e49   :  { %v3260_v46 = vunpack.c.l.s4 %v4553_v24 }
0x2e4b   :  { %v3261_v16 = vunpack.c.0.s8 %v3260_v46 }
0x2e4c   :  { %3243 = vrot.lane.b32.xlu1 %v5249_v47, %s4551_s1  ;;  %v3249_v47 = vsel %vm73_vm1, %v4949_v15, %v5057_v20 }
0x2e4d   :  { %v3264_v53 = vsub.s32 %v3261_v16, %v3263_v21 }
0x2eb6   :  { %v3227_v36 = vpop.permute.xlu1 %3226 }
0x2eb7   :  { %v3229_v37 = vadd.f32 %v3227_v36, %v3219_v45 }
0x2eb9   :  { %4545 = vtanh.f32 %v3229_v37 }
0x2eba   :  { %v3241_v44 = vpop.permute.xlu1 %3240 }
0x2ebb   :  { %v3253_v31 = vsel %vm73_vm1, %v3241_v44, %v5222_v3 }
0x2ebe   :  { %v3244_v49 = vpop.permute.xlu1 %3243 }
0x2ec3   :  { %v4546_v40 = vpop.eup %4545 }
0x2ec4   :  { %3232 = vrot.lane.b32.xlu0 %v4546_v40, %s4547_s11 }
0x2ec8   :  { %3237 = vrot.lane.b32.xlu0 %v5095_v61, %s4551_s1  ;;  %v3254_v61 = vsel %vm273_vm2, %v3253_v31, %v3244_v49 }
0x2ec9   :  { %v3255_v38 = vsel %vm3251_vm3, %v3254_v61, %v3032_v18 }
0x2f36   :  { %v3233_v41 = vpop.permute.xlu0 %3232 }
0x2f37   :  { %v3235_v42 = vmul.f32 %v4544_v32, %v3233_v41 }
0x2f39   :  { %3247 = vrot.lane.b32.xlu0 %v3235_v42, %s4552_s28 }
0x2f3a   :  { %v3238_v17 = vpop.permute.xlu0 %3237 }
0x2f3b   :  { %v3250_v50 = vsel %vm273_vm2, %v3249_v47, %v3238_v17 }
0x2f3c   :  { %v3252_v51 = vsel %vm3251_vm3, %v3250_v50, %v5136_v43 }
0x2f3d   :  { %v3258_v52 = vcombine.low %v3252_v51, %v3255_v38 }
0x2f3f   :  { %v3265_v20 = vrot.slane %v3258_v52, %v3264_v53 }
0x2fab   :  { %v3248_v15 = vpop.permute.xlu0 %3247 }
0x2fac   :  { %v3272_v54 = vrot.slane %v3248_v15, %v3264_v53 }
0x2fae   :  { %v3273_v9 = vcombine.low %v3265_v20, %v3272_v54 }
0x2fb0   :  { %3280 = vst.msk [vmem:[%s5308_s9] sm:$0x3f] %vm3279_vm8, %v3273_v9 }

</bundles_post_ra>
